<compile_context>
chip_gen: v7x
topology: tpu7x:2x2x1
jax: 0.10.0
libtpu: 0.0.40
codegen_flags: <defaults>
</compile_context>

<pallas_src>
import functools
from typing import NamedTuple

import numpy as np
import jax
import jax.numpy as jnp
from jax import lax
from jax.experimental import pallas as pl
from jax.experimental.pallas import tpu as pltpu


# ----------------------------- static layer config --------------------------
class LayerCfg(NamedTuple):
    K: int
    stride: int
    cin: int
    cout: int
    pad: int
    F_in: int
    F_pad: int
    F_dense: int   # F_pad - K + 1 : number of dense (stride-1) conv positions
    F_out: int
    act: bool


def _build_cfgs(F0, specs):
    cfgs = []
    F_in = F0
    for (cin, cout, K, stride, act) in specs:
        pad = K // 2
        F_pad = F_in + 2 * pad
        F_dense = F_pad - K + 1
        F_out = (F_pad - K) // stride + 1
        # Every sampled dense position must lie fully inside the padded segment.
        assert (F_out - 1) * stride + K <= F_pad, (F_out, stride, K, F_pad)
        cfgs.append(LayerCfg(K, stride, cin, cout, pad, F_in, F_pad,
                             F_dense, F_out, bool(act)))
        F_in = F_out
    return tuple(cfgs)


@functools.lru_cache(maxsize=None)
def _subsample_matrix_np(F_dense, F_out, stride):
    """Shared per-segment 0/1 subsample: picks dense position f*stride -> f."""
    S = np.zeros((F_dense, F_out), np.float32)
    S[np.arange(F_out) * stride, np.arange(F_out)] = 1.0
    return S


# ----------------------------- fused Pallas kernel ---------------------------
def _fused_pd_kernel(*refs, cfgs, N, leak):
    """Whole PeriodDiscriminator conv stack in one grid-less kernel.

    Inputs : x[N, 1, F0], then per layer: w2[Cout, K*Cin], b[1, Cout, 1],
             (Ssub[F_dense, F_out] only for strided layers).
    Outputs: per layer fmap[N, Cout, F_out]   (time F on the lane axis).
    Scratch: act ping/pong [N, Cmax, Fpad_max] + one shared im2col buffer.
    """
    L = len(cfgs)
    it = iter(refs)
    x_ref = next(it)
    w_refs, b_refs, s_refs = [], [], []
    for c in cfgs:
        w_refs.append(next(it))
        b_refs.append(next(it))
        s_refs.append(next(it) if c.stride > 1 else None)
    out_refs = [next(it) for _ in range(L)]
    act_a = next(it)
    act_b = next(it)
    col_ref = next(it)
    act_sc = (act_a, act_b)

    # -- layer-0 halo zero-padding done in VMEM (no wrapper jnp.pad) ----------
    c0 = cfgs[0]
    act_a[...] = jnp.zeros(act_a.shape, act_a.dtype)
    act_a[:, 0:c0.cin, c0.pad:c0.pad + c0.F_in] = x_ref[...]

    # -- conv stack: activations stay in VMEM ---------------------------------
    for l, c in enumerate(cfgs):
        src = act_sc[l % 2]
        KC = c.K * c.cin

        # im2col into the single shared scratch: K contiguous shifted copies.
        for k in range(c.K):
            col_ref[:, k * c.cin:(k + 1) * c.cin, 0:c.F_dense] = \
                src[:, 0:c.cin, k:k + c.F_dense]
        cols = col_ref[:, 0:KC, 0:c.F_dense]                   # [N, KC, Fd]

        # One batched MXU matmul per conv (batch = B*period segments).
        w_b = jnp.broadcast_to(w_refs[l][...][None], (N, c.cout, KC))
        y = jnp.einsum('nij,njk->nik', w_b, cols,
                       preferred_element_type=jnp.float32)     # [N, Cout, Fd]

        # Stride subsample via a small shared 0/1 matrix (skip when stride==1,
        # where F_out == F_dense).
        if c.stride > 1:
            s_b = jnp.broadcast_to(s_refs[l][...][None], (N, c.F_dense, c.F_out))
            y = jnp.einsum('nij,njk->nik', y, s_b,
                           preferred_element_type=jnp.float32)  # [N, Cout, Fout]

        y = y + b_refs[l][...]
        if c.act:
            y = jnp.where(y >= 0, y, leak * y)                  # LeakyReLU
        out_refs[l][...] = y.astype(out_refs[l].dtype)

        # Halo re-pad for the next layer: zero + row copy (no selection matmul).
        if l < L - 1:
            cn = cfgs[l + 1]
            dst = act_sc[(l + 1) % 2]
            dst[...] = jnp.zeros(dst.shape, dst.dtype)
            dst[:, 0:c.cout, cn.pad:cn.pad + cn.F_in] = y


# ----------------------------- jitted per-period wrapper ---------------------
@functools.partial(jax.jit, static_argnames=("period", "strides", "acts", "leak"))
def _period_forward(inputs, weights, biases, *, period, strides, acts, leak):
    B, T = inputs.shape
    if T % period != 0:
        padsize = period - T % period
        inputs = jnp.pad(inputs, ((0, 0), (0, padsize)), mode="reflect")
        T = T + padsize
    F0 = T // period
    N = B * period

    specs = tuple((int(w.shape[1]), int(w.shape[0]), int(w.shape[2]), s, a)
                  for w, s, a in zip(weights, strides, acts))
    cfgs = _build_cfgs(F0, specs)
    L = len(cfgs)

    # [B, T] -> [B, F0, P] -> [B, P, F0] -> [N, 1, F0]   (single layout prep)
    x3d = inputs.reshape(B, F0, period).transpose(0, 2, 1)
    x3d = x3d.reshape(N, 1, F0).astype(jnp.float32)

    flat = [x3d]
    for c, w, b in zip(cfgs, weights, biases):
        # w[o, c, k] -> w2[o, k*Cin + c]  (matches cols[n, k*Cin + c, f])
        w2 = jnp.transpose(w, (0, 2, 1)).reshape(c.cout, c.K * c.cin)
        flat.append(w2.astype(jnp.float32))
        flat.append(b.reshape(1, c.cout, 1).astype(jnp.float32))
        if c.stride > 1:
            flat.append(jnp.asarray(
                _subsample_matrix_np(c.F_dense, c.F_out, c.stride)))

    out_shape = [jax.ShapeDtypeStruct((N, c.cout, c.F_out), jnp.float32)
                 for c in cfgs]

    C_max = max(c.cin for c in cfgs)
    Fp_max = max(c.F_pad for c in cfgs)
    KC_max = max(c.K * c.cin for c in cfgs)
    Fd_max = max(c.F_dense for c in cfgs)
    scratch = [
        pltpu.VMEM((N, C_max, Fp_max), jnp.float32),    # activation ping
        pltpu.VMEM((N, C_max, Fp_max), jnp.float32),    # activation pong
        pltpu.VMEM((N, KC_max, Fd_max), jnp.float32),   # shared im2col buffer
    ]

    vmem = pltpu.MemorySpace.VMEM
    kernel = functools.partial(_fused_pd_kernel, cfgs=cfgs, N=N, leak=leak)
    outs = pl.pallas_call(
        kernel,
        out_shape=out_shape,
        in_specs=[pl.BlockSpec(memory_space=vmem)] * len(flat),
        out_specs=[pl.BlockSpec(memory_space=vmem)] * L,
        scratch_shapes=scratch,
    )(*flat)

    # single post-kernel layout conversion per fmap (torch NCHW [B, C, F, P])
    fmap = [y.reshape(B, period, c.cout, c.F_out).transpose(0, 2, 3, 1)
            for y, c in zip(outs, cfgs)]
    cl = cfgs[-1]
    out = outs[-1].reshape(B, period, cl.F_out).transpose(0, 2, 1)
    out = out.reshape(B, cl.F_out * period)
    return out, fmap


# ----------------------------- forward wrappers ------------------------------
def period_discriminator_forward(inputs, layers, *, period, leak):
    """inputs: (B, T) f32.  layers: list of (w[Cout,Cin,K], b[Cout], stride, act)."""
    weights = tuple(w for (w, b, s, a) in layers)
    biases = tuple(b for (w, b, s, a) in layers)
    strides = tuple(int(s) for (w, b, s, a) in layers)
    acts = tuple(bool(a) for (w, b, s, a) in layers)
    return _period_forward(inputs, weights, biases, period=int(period),
                           strides=strides, acts=acts, leak=float(leak))


def discriminator_forward(inputs, per_period_layers, periods, *, leak):
    """NANSY++ Discriminator = MultiPeriodDiscriminator over `periods`."""
    results, fmaps = [], []
    for period, layers in zip(periods, per_period_layers):
        out, fmap = period_discriminator_forward(inputs, layers,
                                                 period=period, leak=leak)
        results.append(out)
        fmaps.append(fmap)
    return results, fmaps


# ----------------------------- pure-JAX reference ----------------------------
def reference_period_forward(inputs, layers, *, period, leak):
    """layers: list of (w[Cout,Cin,K,1], b[Cout], stride, act) in torch layout."""
    B, T = inputs.shape
    if T % period != 0:
        padsize = period - T % period
        inputs = jnp.pad(inputs, ((0, 0), (0, padsize)), mode="reflect")
        T = T + padsize
    x = inputs.reshape(B, 1, T // period, period)
    fmap = []
    for (w, b, stride, act) in layers:
        K = w.shape[2]
        pad = K // 2
        x = lax.conv_general_dilated(
            x, w, window_strides=(stride, 1), padding=((pad, pad), (0, 0)),
            dimension_numbers=("NCHW", "OIHW", "NCHW"),
            precision=lax.Precision.HIGHEST)
        x = x + b[None, :, None, None]
        if act:
            x = jnp.where(x >= 0, x, leak * x)
        fmap.append(x)
    return x.reshape(B, -1), fmap


def reference_discriminator_forward(inputs, per_period_layers, periods, *, leak):
    results, fmaps = [], []
    for period, layers in zip(periods, per_period_layers):
        out, fmap = reference_period_forward(inputs, layers,
                                             period=period, leak=leak)
        results.append(out)
        fmaps.append(fmap)
    return results, fmaps


# ----------------------------- parameter setup -------------------------------
def make_conv_params(key, cin, cout, K):
    """Deterministic weight-norm Conv2d params (weight-norm resolved here)."""
    kv, kg, kb = jax.random.split(key, 3)
    v = jax.random.normal(kv, (cout, cin, K), jnp.float32) * 0.1
    g = 1.0 + 0.1 * jax.random.normal(kg, (cout,), jnp.float32)
    norm = jnp.sqrt(jnp.sum(v * v, axis=(1, 2), keepdims=True))
    w = g[:, None, None] * v / norm                  # torch layout (Cout, Cin, K)
    b = 0.1 * jax.random.normal(kb, (cout,), jnp.float32)
    return w, b


if __name__ == "__main__":
    # Small config consistent with the module's __init__.
    channels = [8, 16]
    periods = [2, 3, 5]          # period=3,5 exercise the reflect-pad branch
    kernels = 5
    strides = 3
    postkernels = 3
    leak = 0.1
    B, T = 2, 64

    key = jax.random.PRNGKey(0)
    key, xkey = jax.random.split(key)
    inputs = jax.random.normal(xkey, (B, T), jnp.float32)

    # (cin, cout, K, stride, apply_leaky_relu) per conv, matching the module.
    conv_specs = [(i, o, kernels, strides, True)
                  for i, o in zip([1] + channels, channels)]
    conv_specs.append((channels[-1], channels[-1], kernels, 1, True))
    conv_specs.append((channels[-1], 1, postkernels, 1, False))   # postconv

    per_period_layers, per_period_layers_ref = [], []
    for _ in periods:
        layers_p, layers_ref_p = [], []
        for (cin, cout, K, stride, act) in conv_specs:
            key, sub = jax.random.split(key)
            w, b = make_conv_params(sub, cin, cout, K)   # (Cout, Cin, K)
            layers_p.append((w, b, stride, act))
            layers_ref_p.append((w[..., None], b, stride, act))  # (Cout,Cin,K,1)
        per_period_layers.append(layers_p)
        per_period_layers_ref.append(layers_ref_p)

    results, fmaps = discriminator_forward(
        inputs, per_period_layers, periods, leak=leak)
    results = [jax.block_until_ready(r) for r in results]
    fmaps = [[jax.block_until_ready(f) for f in fmap] for fmap in fmaps]

    ref_results, ref_fmaps = reference_discriminator_forward(
        inputs, per_period_layers_ref, periods, leak=leak)

    for out, ref_out in zip(results, ref_results):
        assert out.shape == ref_out.shape, (out.shape, ref_out.shape)
        assert bool(jnp.allclose(out, ref_out, atol=1e-3, rtol=1e-3))
    for fmap, ref_fmap in zip(fmaps, ref_fmaps):
        for fm, rfm in zip(fmap, ref_fmap):
            assert fm.shape == rfm.shape, (fm.shape, rfm.shape)
            assert bool(jnp.allclose(fm, rfm, atol=1e-3, rtol=1e-3))

    print("KERNEL_OK")
</pallas_src>

<mosaic_0001>
module attributes {stable_mosaic.version = 11 : i64} {
  func.func @_fused_pd_kernel(%arg0: memref<4x1x32xf32, #tpu.memory_space<vmem>>, %arg1: memref<8x5xf32, #tpu.memory_space<vmem>>, %arg2: memref<1x8x1xf32, #tpu.memory_space<vmem>>, %arg3: memref<32x11xf32, #tpu.memory_space<vmem>>, %arg4: memref<16x40xf32, #tpu.memory_space<vmem>>, %arg5: memref<1x16x1xf32, #tpu.memory_space<vmem>>, %arg6: memref<11x4xf32, #tpu.memory_space<vmem>>, %arg7: memref<16x80xf32, #tpu.memory_space<vmem>>, %arg8: memref<1x16x1xf32, #tpu.memory_space<vmem>>, %arg9: memref<1x48xf32, #tpu.memory_space<vmem>>, %arg10: memref<1x1x1xf32, #tpu.memory_space<vmem>>, %arg11: memref<4x8x11xf32, #tpu.memory_space<vmem>>, %arg12: memref<4x16x4xf32, #tpu.memory_space<vmem>>, %arg13: memref<4x16x4xf32, #tpu.memory_space<vmem>>, %arg14: memref<4x1x4xf32, #tpu.memory_space<vmem>>, %arg15: memref<4x16x36xf32, #tpu.memory_space<vmem>>, %arg16: memref<4x16x36xf32, #tpu.memory_space<vmem>>, %arg17: memref<4x80x32xf32, #tpu.memory_space<vmem>>) attributes {dimension_semantics = [], scalar_prefetch = 0 : i64, scratch_operands = 3 : i64, tpu.core_type = #tpu.core_type<tc>} {
    %cst = arith.constant 0.000000e+00 : f32
    %0 = vector.broadcast %cst : f32 to vector<4x16x36xf32>
    %c0 = arith.constant 0 : index
    %c0_0 = arith.constant 0 : index
    %c0_1 = arith.constant 0 : index
    %1 = vector.load %arg15[%c0, %c0_0, %c0_1] : memref<4x16x36xf32, #tpu.memory_space<vmem>>, vector<4x16x36xf32>
    tpu.vector_store %arg15[%c0, %c0_0, %c0_1], %0 {strides = array<i32>} : memref<4x16x36xf32, #tpu.memory_space<vmem>>, vector<4x16x36xf32>,
    %c0_2 = arith.constant 0 : index
    %c0_3 = arith.constant 0 : index
    %c0_4 = arith.constant 0 : index
    %2 = vector.load %arg0[%c0_2, %c0_3, %c0_4] : memref<4x1x32xf32, #tpu.memory_space<vmem>>, vector<4x1x32xf32>
    %c0_5 = arith.constant 0 : index
    %c0_6 = arith.constant 0 : index
    %c2 = arith.constant 2 : index
    %3 = vector.load %arg15[%c0_5, %c0_6, %c2] : memref<4x16x36xf32, #tpu.memory_space<vmem>>, vector<4x1x32xf32>
    tpu.vector_store %arg15[%c0_5, %c0_6, %c2], %2 {strides = array<i32>} : memref<4x16x36xf32, #tpu.memory_space<vmem>>, vector<4x1x32xf32>,
    %c0_7 = arith.constant 0 : index
    %c0_8 = arith.constant 0 : index
    %c0_9 = arith.constant 0 : index
    %4 = vector.load %arg15[%c0_7, %c0_8, %c0_9] : memref<4x16x36xf32, #tpu.memory_space<vmem>>, vector<4x1x32xf32>
    %c0_10 = arith.constant 0 : index
    %c0_11 = arith.constant 0 : index
    %c0_12 = arith.constant 0 : index
    %5 = vector.load %arg17[%c0_10, %c0_11, %c0_12] : memref<4x80x32xf32, #tpu.memory_space<vmem>>, vector<4x1x32xf32>
    tpu.vector_store %arg17[%c0_10, %c0_11, %c0_12], %4 {strides = array<i32>} : memref<4x80x32xf32, #tpu.memory_space<vmem>>, vector<4x1x32xf32>,
    %c0_13 = arith.constant 0 : index
    %c0_14 = arith.constant 0 : index
    %c1 = arith.constant 1 : index
    %6 = vector.load %arg15[%c0_13, %c0_14, %c1] : memref<4x16x36xf32, #tpu.memory_space<vmem>>, vector<4x1x32xf32>
    %c0_15 = arith.constant 0 : index
    %c1_16 = arith.constant 1 : index
    %c0_17 = arith.constant 0 : index
    %7 = vector.load %arg17[%c0_15, %c1_16, %c0_17] : memref<4x80x32xf32, #tpu.memory_space<vmem>>, vector<4x1x32xf32>
    tpu.vector_store %arg17[%c0_15, %c1_16, %c0_17], %6 {strides = array<i32>} : memref<4x80x32xf32, #tpu.memory_space<vmem>>, vector<4x1x32xf32>,
    %c0_18 = arith.constant 0 : index
    %c0_19 = arith.constant 0 : index
    %c2_20 = arith.constant 2 : index
    %8 = vector.load %arg15[%c0_18, %c0_19, %c2_20] : memref<4x16x36xf32, #tpu.memory_space<vmem>>, vector<4x1x32xf32>
    %c0_21 = arith.constant 0 : index
    %c2_22 = arith.constant 2 : index
    %c0_23 = arith.constant 0 : index
    %9 = vector.load %arg17[%c0_21, %c2_22, %c0_23] : memref<4x80x32xf32, #tpu.memory_space<vmem>>, vector<4x1x32xf32>
    tpu.vector_store %arg17[%c0_21, %c2_22, %c0_23], %8 {strides = array<i32>} : memref<4x80x32xf32, #tpu.memory_space<vmem>>, vector<4x1x32xf32>,
    %c0_24 = arith.constant 0 : index
    %c0_25 = arith.constant 0 : index
    %c3 = arith.constant 3 : index
    %10 = vector.load %arg15[%c0_24, %c0_25, %c3] : memref<4x16x36xf32, #tpu.memory_space<vmem>>, vector<4x1x32xf32>
    %c0_26 = arith.constant 0 : index
    %c3_27 = arith.constant 3 : index
    %c0_28 = arith.constant 0 : index
    %11 = vector.load %arg17[%c0_26, %c3_27, %c0_28] : memref<4x80x32xf32, #tpu.memory_space<vmem>>, vector<4x1x32xf32>
    tpu.vector_store %arg17[%c0_26, %c3_27, %c0_28], %10 {strides = array<i32>} : memref<4x80x32xf32, #tpu.memory_space<vmem>>, vector<4x1x32xf32>,
    %c0_29 = arith.constant 0 : index
    %c0_30 = arith.constant 0 : index
    %c4 = arith.constant 4 : index
    %12 = vector.load %arg15[%c0_29, %c0_30, %c4] : memref<4x16x36xf32, #tpu.memory_space<vmem>>, vector<4x1x32xf32>
    %c0_31 = arith.constant 0 : index
    %c4_32 = arith.constant 4 : index
    %c0_33 = arith.constant 0 : index
    %13 = vector.load %arg17[%c0_31, %c4_32, %c0_33] : memref<4x80x32xf32, #tpu.memory_space<vmem>>, vector<4x1x32xf32>
    tpu.vector_store %arg17[%c0_31, %c4_32, %c0_33], %12 {strides = array<i32>} : memref<4x80x32xf32, #tpu.memory_space<vmem>>, vector<4x1x32xf32>,
    %c0_34 = arith.constant 0 : index
    %c0_35 = arith.constant 0 : index
    %c0_36 = arith.constant 0 : index
    %14 = vector.load %arg17[%c0_34, %c0_35, %c0_36] : memref<4x80x32xf32, #tpu.memory_space<vmem>>, vector<4x5x32xf32>
    %c0_37 = arith.constant 0 : index
    %c0_38 = arith.constant 0 : index
    %15 = vector.load %arg1[%c0_37, %c0_38] : memref<8x5xf32, #tpu.memory_space<vmem>>, vector<8x5xf32>
    %16 = vector.shape_cast %15 : vector<8x5xf32> to vector<1x8x5xf32>
    %17 = vector.shape_cast %16 : vector<1x8x5xf32> to vector<1x8x5xf32>
    %18 = vector.broadcast %17 : vector<1x8x5xf32> to vector<4x8x5xf32>
    "tpu.trace_start"() <{level = 10 : i32, message = "nij,njk->nik"}> : () -> ()
    %cst_39 = arith.constant dense<0.000000e+00> : vector<4x8x32xf32>
    %19 = tpu.matmul %18, %14, %cst_39 {dimension_numbers = #tpu.dot_dimension_numbers<[2], [1], [1], [2], [0, 0, 0, 1, 1, 2], [0], [0]>} : vector<4x8x5xf32>, vector<4x5x32xf32>, vector<4x8x32xf32> -> vector<4x8x32xf32>
    "tpu.trace_stop"() : () -> ()
    %c0_40 = arith.constant 0 : index
    %c0_41 = arith.constant 0 : index
    %20 = vector.load %arg3[%c0_40, %c0_41] : memref<32x11xf32, #tpu.memory_space<vmem>>, vector<32x11xf32>
    %21 = vector.shape_cast %20 : vector<32x11xf32> to vector<1x32x11xf32>
    %22 = vector.shape_cast %21 : vector<1x32x11xf32> to vector<1x32x11xf32>
    %23 = vector.broadcast %22 : vector<1x32x11xf32> to vector<4x32x11xf32>
    "tpu.trace_start"() <{level = 10 : i32, message = "nij,njk->nik"}> : () -> ()
    %cst_42 = arith.constant dense<0.000000e+00> : vector<4x8x11xf32>
    %24 = tpu.matmul %19, %23, %cst_42 {dimension_numbers = #tpu.dot_dimension_numbers<[2], [1], [1], [2], [0, 0, 0, 1, 1, 2], [0], [0]>} : vector<4x8x32xf32>, vector<4x32x11xf32>, vector<4x8x11xf32> -> vector<4x8x11xf32>
    "tpu.trace_stop"() : () -> ()
    %c0_43 = arith.constant 0 : index
    %c0_44 = arith.constant 0 : index
    %c0_45 = arith.constant 0 : index
    %25 = vector.load %arg2[%c0_43, %c0_44, %c0_45] : memref<1x8x1xf32, #tpu.memory_space<vmem>>, vector<1x8x1xf32>
    %26 = vector.broadcast %25 : vector<1x8x1xf32> to vector<4x8x11xf32>
    %27 = arith.addf %24, %26 : vector<4x8x11xf32>
    %cst_46 = arith.constant 0.000000e+00 : f32
    %28 = vector.broadcast %cst_46 : f32 to vector<4x8x11xf32>
    %29 = arith.cmpf oge, %27, %28 : vector<4x8x11xf32>
    %cst_47 = arith.constant 1.000000e-01 : f32
    %30 = vector.broadcast %cst_47 : f32 to vector<4x8x11xf32>
    %31 = arith.mulf %30, %27 : vector<4x8x11xf32>
    %32 = arith.select %29, %27, %31 : vector<4x8x11xi1>, vector<4x8x11xf32>
    %c0_48 = arith.constant 0 : index
    %c0_49 = arith.constant 0 : index
    %c0_50 = arith.constant 0 : index
    %33 = vector.load %arg11[%c0_48, %c0_49, %c0_50] : memref<4x8x11xf32, #tpu.memory_space<vmem>>, vector<4x8x11xf32>
    tpu.vector_store %arg11[%c0_48, %c0_49, %c0_50], %32 {strides = array<i32>} : memref<4x8x11xf32, #tpu.memory_space<vmem>>, vector<4x8x11xf32>,
    %cst_51 = arith.constant 0.000000e+00 : f32
    %34 = vector.broadcast %cst_51 : f32 to vector<4x16x36xf32>
    %c0_52 = arith.constant 0 : index
    %c0_53 = arith.constant 0 : index
    %c0_54 = arith.constant 0 : index
    %35 = vector.load %arg16[%c0_52, %c0_53, %c0_54] : memref<4x16x36xf32, #tpu.memory_space<vmem>>, vector<4x16x36xf32>
    tpu.vector_store %arg16[%c0_52, %c0_53, %c0_54], %34 {strides = array<i32>} : memref<4x16x36xf32, #tpu.memory_space<vmem>>, vector<4x16x36xf32>,
    %c0_55 = arith.constant 0 : index
    %c0_56 = arith.constant 0 : index
    %c2_57 = arith.constant 2 : index
    %36 = vector.load %arg16[%c0_55, %c0_56, %c2_57] : memref<4x16x36xf32, #tpu.memory_space<vmem>>, vector<4x8x11xf32>
    tpu.vector_store %arg16[%c0_55, %c0_56, %c2_57], %32 {strides = array<i32>} : memref<4x16x36xf32, #tpu.memory_space<vmem>>, vector<4x8x11xf32>,
    %c0_58 = arith.constant 0 : index
    %c0_59 = arith.constant 0 : index
    %c0_60 = arith.constant 0 : index
    %37 = vector.load %arg16[%c0_58, %c0_59, %c0_60] : memref<4x16x36xf32, #tpu.memory_space<vmem>>, vector<4x8x11xf32>
    %c0_61 = arith.constant 0 : index
    %c0_62 = arith.constant 0 : index
    %c0_63 = arith.constant 0 : index
    %38 = vector.load %arg17[%c0_61, %c0_62, %c0_63] : memref<4x80x32xf32, #tpu.memory_space<vmem>>, vector<4x8x11xf32>
    tpu.vector_store %arg17[%c0_61, %c0_62, %c0_63], %37 {strides = array<i32>} : memref<4x80x32xf32, #tpu.memory_space<vmem>>, vector<4x8x11xf32>,
    %c0_64 = arith.constant 0 : index
    %c0_65 = arith.constant 0 : index
    %c1_66 = arith.constant 1 : index
    %39 = vector.load %arg16[%c0_64, %c0_65, %c1_66] : memref<4x16x36xf32, #tpu.memory_space<vmem>>, vector<4x8x11xf32>
    %c0_67 = arith.constant 0 : index
    %c8 = arith.constant 8 : index
    %c0_68 = arith.constant 0 : index
    %40 = vector.load %arg17[%c0_67, %c8, %c0_68] : memref<4x80x32xf32, #tpu.memory_space<vmem>>, vector<4x8x11xf32>
    tpu.vector_store %arg17[%c0_67, %c8, %c0_68], %39 {strides = array<i32>} : memref<4x80x32xf32, #tpu.memory_space<vmem>>, vector<4x8x11xf32>,
    %c0_69 = arith.constant 0 : index
    %c0_70 = arith.constant 0 : index
    %c2_71 = arith.constant 2 : index
    %41 = vector.load %arg16[%c0_69, %c0_70, %c2_71] : memref<4x16x36xf32, #tpu.memory_space<vmem>>, vector<4x8x11xf32>
    %c0_72 = arith.constant 0 : index
    %c16 = arith.constant 16 : index
    %c0_73 = arith.constant 0 : index
    %42 = vector.load %arg17[%c0_72, %c16, %c0_73] : memref<4x80x32xf32, #tpu.memory_space<vmem>>, vector<4x8x11xf32>
    tpu.vector_store %arg17[%c0_72, %c16, %c0_73], %41 {strides = array<i32>} : memref<4x80x32xf32, #tpu.memory_space<vmem>>, vector<4x8x11xf32>,
    %c0_74 = arith.constant 0 : index
    %c0_75 = arith.constant 0 : index
    %c3_76 = arith.constant 3 : index
    %43 = vector.load %arg16[%c0_74, %c0_75, %c3_76] : memref<4x16x36xf32, #tpu.memory_space<vmem>>, vector<4x8x11xf32>
    %c0_77 = arith.constant 0 : index
    %c24 = arith.constant 24 : index
    %c0_78 = arith.constant 0 : index
    %44 = vector.load %arg17[%c0_77, %c24, %c0_78] : memref<4x80x32xf32, #tpu.memory_space<vmem>>, vector<4x8x11xf32>
    tpu.vector_store %arg17[%c0_77, %c24, %c0_78], %43 {strides = array<i32>} : memref<4x80x32xf32, #tpu.memory_space<vmem>>, vector<4x8x11xf32>,
    %c0_79 = arith.constant 0 : index
    %c0_80 = arith.constant 0 : index
    %c4_81 = arith.constant 4 : index
    %45 = vector.load %arg16[%c0_79, %c0_80, %c4_81] : memref<4x16x36xf32, #tpu.memory_space<vmem>>, vector<4x8x11xf32>
    %c0_82 = arith.constant 0 : index
    %c32 = arith.constant 32 : index
    %c0_83 = arith.constant 0 : index
    %46 = vector.load %arg17[%c0_82, %c32, %c0_83] : memref<4x80x32xf32, #tpu.memory_space<vmem>>, vector<4x8x11xf32>
    tpu.vector_store %arg17[%c0_82, %c32, %c0_83], %45 {strides = array<i32>} : memref<4x80x32xf32, #tpu.memory_space<vmem>>, vector<4x8x11xf32>,
    %c0_84 = arith.constant 0 : index
    %c0_85 = arith.constant 0 : index
    %c0_86 = arith.constant 0 : index
    %47 = vector.load %arg17[%c0_84, %c0_85, %c0_86] : memref<4x80x32xf32, #tpu.memory_space<vmem>>, vector<4x40x11xf32>
    %c0_87 = arith.constant 0 : index
    %c0_88 = arith.constant 0 : index
    %48 = vector.load %arg4[%c0_87, %c0_88] : memref<16x40xf32, #tpu.memory_space<vmem>>, vector<16x40xf32>
    %49 = vector.shape_cast %48 : vector<16x40xf32> to vector<1x16x40xf32>
    %50 = vector.shape_cast %49 : vector<1x16x40xf32> to vector<1x16x40xf32>
    %51 = vector.broadcast %50 : vector<1x16x40xf32> to vector<4x16x40xf32>
    "tpu.trace_start"() <{level = 10 : i32, message = "nij,njk->nik"}> : () -> ()
    %cst_89 = arith.constant dense<0.000000e+00> : vector<4x16x11xf32>
    %52 = tpu.matmul %51, %47, %cst_89 {dimension_numbers = #tpu.dot_dimension_numbers<[2], [1], [1], [2], [0, 0, 0, 1, 1, 2], [0], [0]>} : vector<4x16x40xf32>, vector<4x40x11xf32>, vector<4x16x11xf32> -> vector<4x16x11xf32>
    "tpu.trace_stop"() : () -> ()
    %c0_90 = arith.constant 0 : index
    %c0_91 = arith.constant 0 : index
    %53 = vector.load %arg6[%c0_90, %c0_91] : memref<11x4xf32, #tpu.memory_space<vmem>>, vector<11x4xf32>
    %54 = vector.shape_cast %53 : vector<11x4xf32> to vector<1x11x4xf32>
    %55 = vector.shape_cast %54 : vector<1x11x4xf32> to vector<1x11x4xf32>
    %56 = vector.broadcast %55 : vector<1x11x4xf32> to vector<4x11x4xf32>
    "tpu.trace_start"() <{level = 10 : i32, message = "nij,njk->nik"}> : () -> ()
    %cst_92 = arith.constant dense<0.000000e+00> : vector<4x16x4xf32>
    %57 = tpu.matmul %52, %56, %cst_92 {dimension_numbers = #tpu.dot_dimension_numbers<[2], [1], [1], [2], [0, 0, 0, 1, 1, 2], [0], [0]>} : vector<4x16x11xf32>, vector<4x11x4xf32>, vector<4x16x4xf32> -> vector<4x16x4xf32>
    "tpu.trace_stop"() : () -> ()
    %c0_93 = arith.constant 0 : index
    %c0_94 = arith.constant 0 : index
    %c0_95 = arith.constant 0 : index
    %58 = vector.load %arg5[%c0_93, %c0_94, %c0_95] : memref<1x16x1xf32, #tpu.memory_space<vmem>>, vector<1x16x1xf32>
    %59 = vector.broadcast %58 : vector<1x16x1xf32> to vector<4x16x4xf32>
    %60 = arith.addf %57, %59 : vector<4x16x4xf32>
    %cst_96 = arith.constant 0.000000e+00 : f32
    %61 = vector.broadcast %cst_96 : f32 to vector<4x16x4xf32>
    %62 = arith.cmpf oge, %60, %61 : vector<4x16x4xf32>
    %cst_97 = arith.constant 1.000000e-01 : f32
    %63 = vector.broadcast %cst_97 : f32 to vector<4x16x4xf32>
    %64 = arith.mulf %63, %60 : vector<4x16x4xf32>
    %65 = arith.select %62, %60, %64 : vector<4x16x4xi1>, vector<4x16x4xf32>
    %c0_98 = arith.constant 0 : index
    %c0_99 = arith.constant 0 : index
    %c0_100 = arith.constant 0 : index
    %66 = vector.load %arg12[%c0_98, %c0_99, %c0_100] : memref<4x16x4xf32, #tpu.memory_space<vmem>>, vector<4x16x4xf32>
    tpu.vector_store %arg12[%c0_98, %c0_99, %c0_100], %65 {strides = array<i32>} : memref<4x16x4xf32, #tpu.memory_space<vmem>>, vector<4x16x4xf32>,
    %cst_101 = arith.constant 0.000000e+00 : f32
    %67 = vector.broadcast %cst_101 : f32 to vector<4x16x36xf32>
    %c0_102 = arith.constant 0 : index
    %c0_103 = arith.constant 0 : index
    %c0_104 = arith.constant 0 : index
    %68 = vector.load %arg15[%c0_102, %c0_103, %c0_104] : memref<4x16x36xf32, #tpu.memory_space<vmem>>, vector<4x16x36xf32>
    tpu.vector_store %arg15[%c0_102, %c0_103, %c0_104], %67 {strides = array<i32>} : memref<4x16x36xf32, #tpu.memory_space<vmem>>, vector<4x16x36xf32>,
    %c0_105 = arith.constant 0 : index
    %c0_106 = arith.constant 0 : index
    %c2_107 = arith.constant 2 : index
    %69 = vector.load %arg15[%c0_105, %c0_106, %c2_107] : memref<4x16x36xf32, #tpu.memory_space<vmem>>, vector<4x16x4xf32>
    tpu.vector_store %arg15[%c0_105, %c0_106, %c2_107], %65 {strides = array<i32>} : memref<4x16x36xf32, #tpu.memory_space<vmem>>, vector<4x16x4xf32>,
    %c0_108 = arith.constant 0 : index
    %c0_109 = arith.constant 0 : index
    %c0_110 = arith.constant 0 : index
    %70 = vector.load %arg15[%c0_108, %c0_109, %c0_110] : memref<4x16x36xf32, #tpu.memory_space<vmem>>, vector<4x16x4xf32>
    %c0_111 = arith.constant 0 : index
    %c0_112 = arith.constant 0 : index
    %c0_113 = arith.constant 0 : index
    %71 = vector.load %arg17[%c0_111, %c0_112, %c0_113] : memref<4x80x32xf32, #tpu.memory_space<vmem>>, vector<4x16x4xf32>
    tpu.vector_store %arg17[%c0_111, %c0_112, %c0_113], %70 {strides = array<i32>} : memref<4x80x32xf32, #tpu.memory_space<vmem>>, vector<4x16x4xf32>,
    %c0_114 = arith.constant 0 : index
    %c0_115 = arith.constant 0 : index
    %c1_116 = arith.constant 1 : index
    %72 = vector.load %arg15[%c0_114, %c0_115, %c1_116] : memref<4x16x36xf32, #tpu.memory_space<vmem>>, vector<4x16x4xf32>
    %c0_117 = arith.constant 0 : index
    %c16_118 = arith.constant 16 : index
    %c0_119 = arith.constant 0 : index
    %73 = vector.load %arg17[%c0_117, %c16_118, %c0_119] : memref<4x80x32xf32, #tpu.memory_space<vmem>>, vector<4x16x4xf32>
    tpu.vector_store %arg17[%c0_117, %c16_118, %c0_119], %72 {strides = array<i32>} : memref<4x80x32xf32, #tpu.memory_space<vmem>>, vector<4x16x4xf32>,
    %c0_120 = arith.constant 0 : index
    %c0_121 = arith.constant 0 : index
    %c2_122 = arith.constant 2 : index
    %74 = vector.load %arg15[%c0_120, %c0_121, %c2_122] : memref<4x16x36xf32, #tpu.memory_space<vmem>>, vector<4x16x4xf32>
    %c0_123 = arith.constant 0 : index
    %c32_124 = arith.constant 32 : index
    %c0_125 = arith.constant 0 : index
    %75 = vector.load %arg17[%c0_123, %c32_124, %c0_125] : memref<4x80x32xf32, #tpu.memory_space<vmem>>, vector<4x16x4xf32>
    tpu.vector_store %arg17[%c0_123, %c32_124, %c0_125], %74 {strides = array<i32>} : memref<4x80x32xf32, #tpu.memory_space<vmem>>, vector<4x16x4xf32>,
    %c0_126 = arith.constant 0 : index
    %c0_127 = arith.constant 0 : index
    %c3_128 = arith.constant 3 : index
    %76 = vector.load %arg15[%c0_126, %c0_127, %c3_128] : memref<4x16x36xf32, #tpu.memory_space<vmem>>, vector<4x16x4xf32>
    %c0_129 = arith.constant 0 : index
    %c48 = arith.constant 48 : index
    %c0_130 = arith.constant 0 : index
    %77 = vector.load %arg17[%c0_129, %c48, %c0_130] : memref<4x80x32xf32, #tpu.memory_space<vmem>>, vector<4x16x4xf32>
    tpu.vector_store %arg17[%c0_129, %c48, %c0_130], %76 {strides = array<i32>} : memref<4x80x32xf32, #tpu.memory_space<vmem>>, vector<4x16x4xf32>,
    %c0_131 = arith.constant 0 : index
    %c0_132 = arith.constant 0 : index
    %c4_133 = arith.constant 4 : index
    %78 = vector.load %arg15[%c0_131, %c0_132, %c4_133] : memref<4x16x36xf32, #tpu.memory_space<vmem>>, vector<4x16x4xf32>
    %c0_134 = arith.constant 0 : index
    %c64 = arith.constant 64 : index
    %c0_135 = arith.constant 0 : index
    %79 = vector.load %arg17[%c0_134, %c64, %c0_135] : memref<4x80x32xf32, #tpu.memory_space<vmem>>, vector<4x16x4xf32>
    tpu.vector_store %arg17[%c0_134, %c64, %c0_135], %78 {strides = array<i32>} : memref<4x80x32xf32, #tpu.memory_space<vmem>>, vector<4x16x4xf32>,
    %c0_136 = arith.constant 0 : index
    %c0_137 = arith.constant 0 : index
    %c0_138 = arith.constant 0 : index
    %80 = vector.load %arg17[%c0_136, %c0_137, %c0_138] : memref<4x80x32xf32, #tpu.memory_space<vmem>>, vector<4x80x4xf32>
    %c0_139 = arith.constant 0 : index
    %c0_140 = arith.constant 0 : index
    %81 = vector.load %arg7[%c0_139, %c0_140] : memref<16x80xf32, #tpu.memory_space<vmem>>, vector<16x80xf32>
    %82 = vector.shape_cast %81 : vector<16x80xf32> to vector<1x16x80xf32>
    %83 = vector.shape_cast %82 : vector<1x16x80xf32> to vector<1x16x80xf32>
    %84 = vector.broadcast %83 : vector<1x16x80xf32> to vector<4x16x80xf32>
    "tpu.trace_start"() <{level = 10 : i32, message = "nij,njk->nik"}> : () -> ()
    %cst_141 = arith.constant dense<0.000000e+00> : vector<4x16x4xf32>
    %85 = tpu.matmul %84, %80, %cst_141 {dimension_numbers = #tpu.dot_dimension_numbers<[2], [1], [1], [2], [0, 0, 0, 1, 1, 2], [0], [0]>} : vector<4x16x80xf32>, vector<4x80x4xf32>, vector<4x16x4xf32> -> vector<4x16x4xf32>
    "tpu.trace_stop"() : () -> ()
    %c0_142 = arith.constant 0 : index
    %c0_143 = arith.constant 0 : index
    %c0_144 = arith.constant 0 : index
    %86 = vector.load %arg8[%c0_142, %c0_143, %c0_144] : memref<1x16x1xf32, #tpu.memory_space<vmem>>, vector<1x16x1xf32>
    %87 = vector.broadcast %86 : vector<1x16x1xf32> to vector<4x16x4xf32>
    %88 = arith.addf %85, %87 : vector<4x16x4xf32>
    %cst_145 = arith.constant 0.000000e+00 : f32
    %89 = vector.broadcast %cst_145 : f32 to vector<4x16x4xf32>
    %90 = arith.cmpf oge, %88, %89 : vector<4x16x4xf32>
    %cst_146 = arith.constant 1.000000e-01 : f32
    %91 = vector.broadcast %cst_146 : f32 to vector<4x16x4xf32>
    %92 = arith.mulf %91, %88 : vector<4x16x4xf32>
    %93 = arith.select %90, %88, %92 : vector<4x16x4xi1>, vector<4x16x4xf32>
    %c0_147 = arith.constant 0 : index
    %c0_148 = arith.constant 0 : index
    %c0_149 = arith.constant 0 : index
    %94 = vector.load %arg13[%c0_147, %c0_148, %c0_149] : memref<4x16x4xf32, #tpu.memory_space<vmem>>, vector<4x16x4xf32>
    tpu.vector_store %arg13[%c0_147, %c0_148, %c0_149], %93 {strides = array<i32>} : memref<4x16x4xf32, #tpu.memory_space<vmem>>, vector<4x16x4xf32>,
    %cst_150 = arith.constant 0.000000e+00 : f32
    %95 = vector.broadcast %cst_150 : f32 to vector<4x16x36xf32>
    %c0_151 = arith.constant 0 : index
    %c0_152 = arith.constant 0 : index
    %c0_153 = arith.constant 0 : index
    %96 = vector.load %arg16[%c0_151, %c0_152, %c0_153] : memref<4x16x36xf32, #tpu.memory_space<vmem>>, vector<4x16x36xf32>
    tpu.vector_store %arg16[%c0_151, %c0_152, %c0_153], %95 {strides = array<i32>} : memref<4x16x36xf32, #tpu.memory_space<vmem>>, vector<4x16x36xf32>,
    %c0_154 = arith.constant 0 : index
    %c0_155 = arith.constant 0 : index
    %c1_156 = arith.constant 1 : index
    %97 = vector.load %arg16[%c0_154, %c0_155, %c1_156] : memref<4x16x36xf32, #tpu.memory_space<vmem>>, vector<4x16x4xf32>
    tpu.vector_store %arg16[%c0_154, %c0_155, %c1_156], %93 {strides = array<i32>} : memref<4x16x36xf32, #tpu.memory_space<vmem>>, vector<4x16x4xf32>,
    %c0_157 = arith.constant 0 : index
    %c0_158 = arith.constant 0 : index
    %c0_159 = arith.constant 0 : index
    %98 = vector.load %arg16[%c0_157, %c0_158, %c0_159] : memref<4x16x36xf32, #tpu.memory_space<vmem>>, vector<4x16x4xf32>
    %c0_160 = arith.constant 0 : index
    %c0_161 = arith.constant 0 : index
    %c0_162 = arith.constant 0 : index
    %99 = vector.load %arg17[%c0_160, %c0_161, %c0_162] : memref<4x80x32xf32, #tpu.memory_space<vmem>>, vector<4x16x4xf32>
    tpu.vector_store %arg17[%c0_160, %c0_161, %c0_162], %98 {strides = array<i32>} : memref<4x80x32xf32, #tpu.memory_space<vmem>>, vector<4x16x4xf32>,
    %c0_163 = arith.constant 0 : index
    %c0_164 = arith.constant 0 : index
    %c1_165 = arith.constant 1 : index
    %100 = vector.load %arg16[%c0_163, %c0_164, %c1_165] : memref<4x16x36xf32, #tpu.memory_space<vmem>>, vector<4x16x4xf32>
    %c0_166 = arith.constant 0 : index
    %c16_167 = arith.constant 16 : index
    %c0_168 = arith.constant 0 : index
    %101 = vector.load %arg17[%c0_166, %c16_167, %c0_168] : memref<4x80x32xf32, #tpu.memory_space<vmem>>, vector<4x16x4xf32>
    tpu.vector_store %arg17[%c0_166, %c16_167, %c0_168], %100 {strides = array<i32>} : memref<4x80x32xf32, #tpu.memory_space<vmem>>, vector<4x16x4xf32>,
    %c0_169 = arith.constant 0 : index
    %c0_170 = arith.constant 0 : index
    %c2_171 = arith.constant 2 : index
    %102 = vector.load %arg16[%c0_169, %c0_170, %c2_171] : memref<4x16x36xf32, #tpu.memory_space<vmem>>, vector<4x16x4xf32>
    %c0_172 = arith.constant 0 : index
    %c32_173 = arith.constant 32 : index
    %c0_174 = arith.constant 0 : index
    %103 = vector.load %arg17[%c0_172, %c32_173, %c0_174] : memref<4x80x32xf32, #tpu.memory_space<vmem>>, vector<4x16x4xf32>
    tpu.vector_store %arg17[%c0_172, %c32_173, %c0_174], %102 {strides = array<i32>} : memref<4x80x32xf32, #tpu.memory_space<vmem>>, vector<4x16x4xf32>,
    %c0_175 = arith.constant 0 : index
    %c0_176 = arith.constant 0 : index
    %c0_177 = arith.constant 0 : index
    %104 = vector.load %arg17[%c0_175, %c0_176, %c0_177] : memref<4x80x32xf32, #tpu.memory_space<vmem>>, vector<4x48x4xf32>
    %c0_178 = arith.constant 0 : index
    %c0_179 = arith.constant 0 : index
    %105 = vector.load %arg9[%c0_178, %c0_179] : memref<1x48xf32, #tpu.memory_space<vmem>>, vector<1x48xf32>
    %106 = vector.shape_cast %105 : vector<1x48xf32> to vector<1x1x48xf32>
    %107 = vector.shape_cast %106 : vector<1x1x48xf32> to vector<1x1x48xf32>
    %108 = vector.broadcast %107 : vector<1x1x48xf32> to vector<4x1x48xf32>
    "tpu.trace_start"() <{level = 10 : i32, message = "nij,njk->nik"}> : () -> ()
    %cst_180 = arith.constant dense<0.000000e+00> : vector<4x1x4xf32>
    %109 = tpu.matmul %108, %104, %cst_180 {dimension_numbers = #tpu.dot_dimension_numbers<[2], [1], [1], [2], [0, 0, 0, 1, 1, 2], [0], [0]>} : vector<4x1x48xf32>, vector<4x48x4xf32>, vector<4x1x4xf32> -> vector<4x1x4xf32>
    "tpu.trace_stop"() : () -> ()
    %c0_181 = arith.constant 0 : index
    %c0_182 = arith.constant 0 : index
    %c0_183 = arith.constant 0 : index
    %110 = vector.load %arg10[%c0_181, %c0_182, %c0_183] : memref<1x1x1xf32, #tpu.memory_space<vmem>>, vector<1x1x1xf32>
    %111 = vector.broadcast %110 : vector<1x1x1xf32> to vector<4x1x4xf32>
    %112 = arith.addf %109, %111 : vector<4x1x4xf32>
    %c0_184 = arith.constant 0 : index
    %c0_185 = arith.constant 0 : index
    %c0_186 = arith.constant 0 : index
    %113 = vector.load %arg14[%c0_184, %c0_185, %c0_186] : memref<4x1x4xf32, #tpu.memory_space<vmem>>, vector<4x1x4xf32>
    tpu.vector_store %arg14[%c0_184, %c0_185, %c0_186], %112 {strides = array<i32>} : memref<4x1x4xf32, #tpu.memory_space<vmem>>, vector<4x1x4xf32>,
    return
  }
}

</mosaic_0001>

<bundles_post_ra>
// kernel: _period_forward.1
= control target key start
LH: loop header
LB: loop body
LE: loop exit
PB: predicated region body
PF: predicated region fallthrough
CT: control target
= control target key end

     0   :  { %vm44_vm0 = vcmask 293888   ;;  %v3510_v2 = vmov 0.0   ;;  %s3511_s17 = smov 2   ;;  %vm89_vm1 = vcmask 270352   ;;  %vm98_vm2 = vcmask 253952   ;;  %s3512_s22 = smov 127   ;;  %s4172_s0 = inlined_call_operand.vmem [shape: f32[4,1,32], index: 0, kind: input, shape index: {}]   ;;  %s4173_s1 = inlined_call_operand.vmem [shape: f32[8,5], index: 1, kind: input, shape index: {}]   ;;  %s4174_s3 = inlined_call_operand.vmem [shape: f32[32,11], index: 3, kind: input, shape index: {}]   ;;  %s4175_s2 = inlined_call_operand.vmem [shape: f32[1,8,1], index: 2, kind: input, shape index: {}]   ;;  %s4176_s11 = inlined_call_operand.vmem [shape: f32[4,8,11], index: 11, kind: output, shape index: {0}]   ;;  %s4177_s4 = inlined_call_operand.vmem [shape: f32[16,40], index: 4, kind: input, shape index: {}]   ;;  %s4178_s5 = inlined_call_operand.vmem [shape: f32[1,16,1], index: 5, kind: input, shape index: {}]   ;;  %s4179_s6 = inlined_call_operand.vmem [shape: f32[11,4], index: 6, kind: input, shape index: {}]   ;;  %s4180_s12 = inlined_call_operand.vmem [shape: f32[4,16,4], index: 12, kind: output, shape index: {1}]   ;;  %s4181_s7 = inlined_call_operand.vmem [shape: f32[16,80], index: 7, kind: input, shape index: {}]   ;;  %s4182_s8 = inlined_call_operand.vmem [shape: f32[1,16,1], index: 8, kind: input, shape index: {}]   ;;  %s4183_s13 = inlined_call_operand.vmem [shape: f32[4,16,4], index: 13, kind: output, shape index: {2}]   ;;  %s4184_s10 = inlined_call_operand.<no memory space> [shape: f32[1,1,1], index: 10, kind: input, shape index: {}]   ;;  %s4185_s9 = inlined_call_operand.vmem [shape: f32[1,48], index: 9, kind: input, shape index: {}]   ;;  %s4186_s14 = inlined_call_operand.vmem [shape: f32[4,1,4], index: 14, kind: output, shape index: {3}]  }
   0x1   :  { %v2809_v0 = vld [vmem:[%s4172_s0] ss:$0 sm:$0xff]  ;;  %v2811_v1 = vld [vmem:[%s4172_s0 + $0x2] ss:$0 sm:$0xff]  ;;  %45 = vst.msk [vmem:[#allocation2] sm:$0xff] %vm44_vm0, %v3510_v2  ;;  %46 = vst.msk [vmem:[#allocation2 + $0x8] sm:$0xff] %vm44_vm0, %v3510_v2  ;;  %3005 = vmatprep.subr.mxu0 %v3510_v2  ;;  %3010 = vmatprep.subr.mxu1 %v3510_v2 }
   0x2   :  { %47 = vst.msk [vmem:[#allocation2 + $0x10] sm:$0xff] %vm44_vm0, %v3510_v2  ;;  %48 = vst.msk [vmem:[#allocation2 + $0x18] sm:$0xff] %vm44_vm0, %v3510_v2  ;;  %77 = vrot.lane.b32.xlu0 %v2809_v0, %s3511_s17  ;;  %81 = vrot.lane.b32.xlu1 %v2811_v1, %s3511_s17  ;;  %v2810_v3 = vld [vmem:[%s4172_s0 + $0x1] ss:$0 sm:$0xff]  ;;  %v2812_v4 = vld [vmem:[%s4172_s0 + $0x3] ss:$0 sm:$0xff] }
   0x3   :  { %49 = vst.msk [vmem:[#allocation2 + $0x20] sm:$0xff] %vm44_vm0, %v3510_v2  ;;  %50 = vst.msk [vmem:[#allocation2 + $0x28] sm:$0xff] %vm44_vm0, %v3510_v2  ;;  %s3513_s0 = smov 126   ;;  %s3514_s23 = smov 125   ;;  %vm3515_vm3 = vmmov 0   ;;  %vm208_vm4 = vcmask 1044480  }
   0x4   :  { %51 = vst.msk [vmem:[#allocation2 + $0x30] sm:$0xff] %vm44_vm0, %v3510_v2  ;;  %52 = vst.msk [vmem:[#allocation2 + $0x38] sm:$0xff] %vm44_vm0, %v3510_v2  ;;  %3007 = vmatprep.mubr.msk.f32.mxu0 %vm3515_vm3, %v3510_v2  ;;  %3012 = vmatprep.mubr.msk.f32.mxu1 %vm3515_vm3, %v3510_v2  ;;  %s3516_s24 = smov 124   ;;  %v203_v38 = vld [vmem:[%s4173_s1] sm:$0xff]  ;;  %vm204_vm5 = vcmask 39936   ;;  %v502_v49 = vld [vmem:[%s4174_s3 + $0x8] sm:$0xff] }
   0x5   :  { %821 = vst.msk [vmem:[#allocation3] sm:$0xff] %vm44_vm0, %v3510_v2  ;;  %822 = vst.msk [vmem:[#allocation3 + $0x8] sm:$0xff] %vm44_vm0, %v3510_v2  ;;  %v501_v48 = vld [vmem:[%s4174_s3] sm:$0xff]  ;;  %v503_v52 = vld [vmem:[%s4174_s3 + $0x10] sm:$0xff]  ;;  %v3517_v54 = vmov 0.0|0.0   ;;  %v3518_v57 = vmov 0  }
   0x6   :  { %823 = vst.msk [vmem:[#allocation3 + $0x10] sm:$0xff] %vm44_vm0, %v3510_v2  ;;  %824 = vst.msk [vmem:[#allocation3 + $0x18] sm:$0xff] %vm44_vm0, %v3510_v2  ;;  %79 = vrot.lane.b32.xlu0 %v2810_v3, %s3511_s17  ;;  %83 = vrot.lane.b32.xlu1 %v2812_v4, %s3511_s17  ;;  %v3302_v50 = vpack.c.bf16 %v502_v49, %v501_v48  ;;  %v504_v53 = vld [vmem:[%s4174_s3 + $0x18] sm:$0xff]  ;;  %v505_v58 = vld [vmem:[%s4175_s2] sm:$0xff]  ;;  %vm511_vm6 = vcmask 261120   ;;  %vm816_vm8 = vcmask 89088  }
   0x7   :  { %825 = vst.msk [vmem:[#allocation3 + $0x20] sm:$0xff] %vm44_vm0, %v3510_v2  ;;  %826 = vst.msk [vmem:[#allocation3 + $0x28] sm:$0xff] %vm44_vm0, %v3510_v2  ;;  %v3305_v55 = vpack.c.bf16 %v504_v53, %v503_v52  ;;  %3508 = vset.pattern.permute.xlu0 %v3518_v57  ;;  %3509 = vset.pattern.permute.xlu1 %v3518_v57  ;;  %vm845_vm12 = vcmask 105488   ;;  %vm976_vm13 = vcmask 326656   ;;  %vm1303_vm14 = vcmask 1042432  }
   0x8   :  { %827 = vst.msk [vmem:[#allocation3 + $0x30] sm:$0xff] %vm44_vm0, %v3510_v2  ;;  %828 = vst.msk [vmem:[#allocation3 + $0x38] sm:$0xff] %vm44_vm0, %v3510_v2  ;;  %vm3519_vm15 = vmmov 1  }
   0x9   :  { %1659 = vst.msk [vmem:[#allocation2 + $0x8] sm:$0xff] %vm44_vm0, %v3510_v2  ;;  %1661 = vst.msk [vmem:[#allocation2 + $0x18] sm:$0xff] %vm44_vm0, %v3510_v2 }
   0xa   :  { %1663 = vst.msk [vmem:[#allocation2 + $0x28] sm:$0xff] %vm44_vm0, %v3510_v2  ;;  %1665 = vst.msk [vmem:[#allocation2 + $0x38] sm:$0xff] %vm44_vm0, %v3510_v2 }
   0xb   :  { %2309 = vst.msk [vmem:[#allocation3 + $0x8] sm:$0xff] %vm44_vm0, %v3510_v2  ;;  %2311 = vst.msk [vmem:[#allocation3 + $0x18] sm:$0xff] %vm44_vm0, %v3510_v2 }
   0xc   :  { %2313 = vst.msk [vmem:[#allocation3 + $0x28] sm:$0xff] %vm44_vm0, %v3510_v2  ;;  %2315 = vst.msk [vmem:[#allocation3 + $0x38] sm:$0xff] %vm44_vm0, %v3510_v2 }
  0x74   :  { %v78_v5 = vpop.permute.xlu0 %77  ;;  %v82_v6 = vpop.permute.xlu1 %81 }
  0x75   :  { %90 = vst.msk [vmem:[#allocation2] sm:$0x1] %vm89_vm1, %v78_v5  ;;  %92 = vst.msk [vmem:[#allocation2 + $0x20] sm:$0x1] %vm89_vm1, %v82_v6 }
  0x78   :  { %v80_v7 = vpop.permute.xlu0 %79  ;;  %v84_v8 = vpop.permute.xlu1 %83 }
  0x79   :  { %91 = vst.msk [vmem:[#allocation2 + $0x10] sm:$0x1] %vm89_vm1, %v80_v7  ;;  %93 = vst.msk [vmem:[#allocation2 + $0x30] sm:$0x1] %vm89_vm1, %v84_v8 }
  0x7c   :  { %v94_v9 = vld [vmem:[#allocation2] sm:$0x1] }
  0x7d   :  { %v103_v10 = vld [vmem:[#allocation2] sm:$0x1]  ;;  %99 = vst.msk [vmem:[#allocation4] sm:$0x1] %vm98_vm2, %v94_v9 }
  0x7e   :  { %v127_v11 = vld [vmem:[#allocation2] sm:$0x1]  ;;  %111 = vrot.lane.b32.xlu0 %v103_v10, %s3512_s22 }
  0x7f   :  { %v96_v12 = vld [vmem:[#allocation2 + $0x20] sm:$0x1] }
  0x80   :  { %v151_v13 = vld [vmem:[#allocation2] sm:$0x1]  ;;  %101 = vst.msk [vmem:[#allocation4 + $0xa0] sm:$0x1] %vm98_vm2, %v96_v12  ;;  %v95_v19 = vld [vmem:[#allocation2 + $0x10] sm:$0x1] }
  0x81   :  { %v175_v14 = vld [vmem:[#allocation2] sm:$0x1]  ;;  %v104_v20 = vld [vmem:[#allocation2 + $0x10] sm:$0x1]  ;;  %100 = vst.msk [vmem:[#allocation4 + $0x50] sm:$0x1] %vm98_vm2, %v95_v19 }
  0x82   :  { %1658 = vst.msk [vmem:[#allocation2] sm:$0xff] %vm44_vm0, %v3510_v2  ;;  %v105_v15 = vld [vmem:[#allocation2 + $0x20] sm:$0x1]  ;;  %v128_v21 = vld [vmem:[#allocation2 + $0x10] sm:$0x1]  ;;  %135 = vrot.lane.b32.xlu0 %v127_v11, %s3513_s0  ;;  %113 = vrot.lane.b32.xlu1 %v104_v20, %s3512_s22 }
  0x83   :  { %v129_v16 = vld [vmem:[#allocation2 + $0x20] sm:$0x1]  ;;  %v97_v22 = vld [vmem:[#allocation2 + $0x30] sm:$0x1] }
  0x84   :  { %v153_v17 = vld [vmem:[#allocation2 + $0x20] sm:$0x1]  ;;  %v152_v23 = vld [vmem:[#allocation2 + $0x10] sm:$0x1]  ;;  %102 = vst.msk [vmem:[#allocation4 + $0xf0] sm:$0x1] %vm98_vm2, %v97_v22 }
  0x85   :  { %v177_v18 = vld [vmem:[#allocation2 + $0x20] sm:$0x1]  ;;  %v176_v24 = vld [vmem:[#allocation2 + $0x10] sm:$0x1] }
  0x86   :  { %1662 = vst.msk [vmem:[#allocation2 + $0x20] sm:$0xff] %vm44_vm0, %v3510_v2  ;;  %1660 = vst.msk [vmem:[#allocation2 + $0x10] sm:$0xff] %vm44_vm0, %v3510_v2  ;;  %v106_v25 = vld [vmem:[#allocation2 + $0x30] sm:$0x1]  ;;  %159 = vrot.lane.b32.xlu0 %v151_v13, %s3514_s23  ;;  %137 = vrot.lane.b32.xlu1 %v128_v21, %s3513_s0 }
  0x87   :  { %v130_v26 = vld [vmem:[#allocation2 + $0x30] sm:$0x1] }
  0x88   :  { %v154_v27 = vld [vmem:[#allocation2 + $0x30] sm:$0x1] }
  0x89   :  { %v178_v28 = vld [vmem:[#allocation2 + $0x30] sm:$0x1] }
  0x8a   :  { %1664 = vst.msk [vmem:[#allocation2 + $0x30] sm:$0xff] %vm44_vm0, %v3510_v2  ;;  %183 = vrot.lane.b32.xlu0 %v175_v14, %s3516_s24  ;;  %161 = vrot.lane.b32.xlu1 %v152_v23, %s3514_s23 }
  0x8e   :  { %115 = vrot.lane.b32.xlu0 %v105_v15, %s3512_s22  ;;  %185 = vrot.lane.b32.xlu1 %v176_v24, %s3516_s24 }
  0x92   :  { %139 = vrot.lane.b32.xlu0 %v129_v16, %s3513_s0  ;;  %117 = vrot.lane.b32.xlu1 %v106_v25, %s3512_s22 }
  0x96   :  { %163 = vrot.lane.b32.xlu0 %v153_v17, %s3514_s23  ;;  %141 = vrot.lane.b32.xlu1 %v130_v26, %s3513_s0 }
  0x9a   :  { %187 = vrot.lane.b32.xlu0 %v177_v18, %s3516_s24  ;;  %165 = vrot.lane.b32.xlu1 %v154_v27, %s3514_s23 }
  0x9e   :  { %189 = vrot.lane.b32.xlu1 %v178_v28, %s3516_s24  ;;  %508 = vperm.xlu0 %3508, %v505_v58  }
  0xf0   :  { %v112_v29 = vpop.permute.xlu0 %111 }
  0xf1   :  { %123 = vst.msk [vmem:[#allocation4 + $0x1] sm:$0x1] %vm98_vm2, %v112_v29 }
  0xf4   :  { %v114_v30 = vpop.permute.xlu1 %113  ;;  %v136_v31 = vpop.permute.xlu0 %135 }
  0xf5   :  { %124 = vst.msk [vmem:[#allocation4 + $0x51] sm:$0x1] %vm98_vm2, %v114_v30  ;;  %147 = vst.msk [vmem:[#allocation4 + $0x2] sm:$0x1] %vm98_vm2, %v136_v31  ;;  %v3799_v30 = vld [vmem:[%s4177_s4] sm:$0xff] }
  0xf8   :  { %v138_v32 = vpop.permute.xlu1 %137  ;;  %v160_v33 = vpop.permute.xlu0 %159 }
  0xf9   :  { %148 = vst.msk [vmem:[#allocation4 + $0x52] sm:$0x1] %vm98_vm2, %v138_v32  ;;  %171 = vst.msk [vmem:[#allocation4 + $0x3] sm:$0x1] %vm98_vm2, %v160_v33 }
  0xfc   :  { %v162_v34 = vpop.permute.xlu1 %161  ;;  %v184_v35 = vpop.permute.xlu0 %183 }
  0xfd   :  { %172 = vst.msk [vmem:[#allocation4 + $0x53] sm:$0x1] %vm98_vm2, %v162_v34  ;;  %195 = vst.msk [vmem:[#allocation4 + $0x4] sm:$0x1] %vm98_vm2, %v184_v35  ;;  %v1285_v34 = vld [vmem:[%s4178_s5] sm:$0xff] }
 0x100   :  { %v186_v36 = vpop.permute.xlu1 %185  ;;  %v116_v37 = vpop.permute.xlu0 %115 }
 0x101   :  { %196 = vst.msk [vmem:[#allocation4 + $0x54] sm:$0x1] %vm98_vm2, %v186_v36  ;;  %125 = vst.msk [vmem:[#allocation4 + $0xa1] sm:$0x1] %vm98_vm2, %v116_v37 }
 0x104   :  { %v118_v39 = vpop.permute.xlu1 %117  ;;  %v140_v40 = vpop.permute.xlu0 %139  ;;  %v199_v41 = vld [vmem:[#allocation4] sm:$0x1f] }
 0x105   :  { %126 = vst.msk [vmem:[#allocation4 + $0xf1] sm:$0x1] %vm98_vm2, %v118_v39  ;;  %149 = vst.msk [vmem:[#allocation4 + $0xa2] sm:$0x1] %vm98_vm2, %v140_v40  ;;  %3006 = vmatpush3.msk.msra.mxu0 %vm208_vm4, %v199_v41 }
 0x106   :  { %3008 = vmatmul.mubr.msk.f32.vlgmr.msra.gmra.mrb[0].mxu0 %vm204_vm5, %v203_v38  ;;  %3015 = vmatprep.subr.mxu0 %v3510_v2 }
 0x107   :  { %3017 = vmatprep.mubr.msk.f32.mxu0 %vm3515_vm3, %v3510_v2 }
 0x108   :  { %v142_v42 = vpop.permute.xlu1 %141  ;;  %v164_v43 = vpop.permute.xlu0 %163  ;;  %v200_v44 = vld [vmem:[#allocation4 + $0x50] sm:$0x1f] }
 0x109   :  { %150 = vst.msk [vmem:[#allocation4 + $0xf2] sm:$0x1] %vm98_vm2, %v142_v42  ;;  %173 = vst.msk [vmem:[#allocation4 + $0xa3] sm:$0x1] %vm98_vm2, %v164_v43  ;;  %3011 = vmatpush3.msk.msra.mxu1 %vm208_vm4, %v200_v44 }
 0x10a   :  { %3013 = vmatmul.mubr.msk.f32.vlgmr.msra.gmra.mrb[0].mxu1 %vm204_vm5, %v203_v38  ;;  %3020 = vmatprep.subr.mxu1 %v3510_v2 }
 0x10b   :  { %3022 = vmatprep.mubr.msk.f32.mxu1 %vm3515_vm3, %v3510_v2 }
 0x10c   :  { %v166_v45 = vpop.permute.xlu1 %165  ;;  %v188_v46 = vpop.permute.xlu0 %187 }
 0x10d   :  { %174 = vst.msk [vmem:[#allocation4 + $0xf3] sm:$0x1] %vm98_vm2, %v166_v45  ;;  %197 = vst.msk [vmem:[#allocation4 + $0xa4] sm:$0x1] %vm98_vm2, %v188_v46 }
 0x110   :  { %v190_v47 = vpop.permute.xlu1 %189 }
 0x111   :  { %198 = vst.msk [vmem:[#allocation4 + $0xf4] sm:$0x1] %vm98_vm2, %v190_v47  ;;  %vm1649_vm2 = vcmask 31744  }
 0x114   :  { %v201_v51 = vld [vmem:[#allocation4 + $0xa0] sm:$0x1f] }
 0x115   :  { %3016 = vmatpush3.msk.msra.mxu0 %vm208_vm4, %v201_v51 }
 0x116   :  { %3018 = vmatmul.mubr.msk.f32.vlgmr.msra.gmra.mrb[2].mxu0 %vm204_vm5, %v203_v38  ;;  %3301 = vmatprep.subr.bf16.mxu0 %v3517_v54 }
 0x117   :  { %3303 = vmatpush3.bf16.msra.mxu0 %v3302_v50  ;;  %3033 = vmatprep.mubr.msk.f32.mxu0 %vm3515_vm3, %v3510_v2 }
 0x118   :  { %v202_v56 = vld [vmem:[#allocation4 + $0xf0] sm:$0x1f]  ;;  %3304 = vmatprep.subr.bf16.mxu0 %v3517_v54 }
 0x119   :  { %3021 = vmatpush3.msk.msra.mxu1 %vm208_vm4, %v202_v56 }
 0x11a   :  { %3023 = vmatmul.mubr.msk.f32.vlgmr.msra.gmra.mrb[2].mxu1 %vm204_vm5, %v203_v38  ;;  %3307 = vmatprep.subr.bf16.mxu1 %v3517_v54 }
 0x11b   :  { %3306 = vmatpush3.bf16.msra.mxu0 %v3305_v55  ;;  %3309 = vmatpush3.bf16.msra.mxu1 %v3302_v50 }
 0x11c   :  { %3310 = vmatprep.subr.bf16.mxu1 %v3517_v54  ;;  %3044 = vmatprep.mubr.msk.f32.mxu1 %vm3515_vm3, %v3510_v2 }
 0x11d   :  { %3313 = vmatprep.subr.bf16.mxu0 %v3517_v54  ;;  %v509_v4 = vpop.permute.xlu0 %508 }
 0x11f   :  { %3312 = vmatpush3.bf16.msra.mxu1 %v3305_v55 }
 0x120   :  { %3319 = vmatprep.subr.bf16.mxu1 %v3517_v54 }
 0x1d9   :  { %v278_v59 = vpop.f32.mrb[0].mxu0 }
 0x1da   :  { %v3009_v60 = vpop.f32.mrb[1].mxu0  ;;  %3034 = vmatmul.mubr.msk.f32.vlgmr.msra.gmra.mrb[4].mxu0 %vm511_vm6, %v278_v59 }
 0x1db   :  { %3315 = vmatpush3.bf16.msra.mxu0 %v3302_v50  ;;  %3055 = vmatprep.mubr.msk.f32.mxu0 %vm3515_vm3, %v3510_v2  ;;  %v975_v60 = vld [vmem:[%s4177_s4 + $0x8] sm:$0xff] }
 0x1dc   :  { %3316 = vmatprep.subr.bf16.mxu0 %v3517_v54 }
 0x1dd   :  { %v351_v61 = vpop.f32.mrb[0].mxu1 }
 0x1de   :  { %v3014_v62 = vpop.f32.mrb[1].mxu1  ;;  %3045 = vmatmul.mubr.msk.f32.vlgmr.msra.gmra.mrb[4].mxu1 %vm511_vm6, %v351_v61 }
 0x1df   :  { %3318 = vmatpush3.bf16.msra.mxu0 %v3305_v55  ;;  %3321 = vmatpush3.bf16.msra.mxu1 %v3302_v50 }
 0x1e0   :  { %3322 = vmatprep.subr.bf16.mxu1 %v3517_v54  ;;  %3066 = vmatprep.mubr.msk.f32.mxu1 %vm3515_vm3, %v3510_v2 }
 0x1e3   :  { %3324 = vmatpush3.bf16.msra.mxu1 %v3305_v55 }
 0x1e9   :  { %v424_v63 = vpop.f32.mrb[2].mxu0 }
 0x1ea   :  { %3056 = vmatmul.mubr.msk.f32.vlgmr.msra.gmra.mrb[6].mxu0 %vm511_vm6, %v424_v63  ;;  %v3019_v0 = vpop.f32.mrb[3].mxu0 }
 0x1eb   :  { %3079 = vmatprep.mubr.msk.f32.mxu0 %vm976_vm13, %v3799_v30 }
 0x1ed   :  { %v497_v1 = vpop.f32.mrb[2].mxu1 }
 0x1ee   :  { %3067 = vmatmul.mubr.msk.f32.vlgmr.msra.gmra.mrb[6].mxu1 %vm511_vm6, %v497_v1  ;;  %v3024_v3 = vpop.f32.mrb[3].mxu1 }
 0x1ef   :  { %3092 = vmatprep.mubr.msk.f32.mxu1 %vm976_vm13, %v3799_v30 }
 0x2ad   :  { %v581_v5 = vpop.f32.mrb[4].mxu0 }
 0x2ae   :  { %v582_v6 = vadd.f32 %v581_v5, %v509_v4  ;;  %v3035_v7 = vpop.f32.mrb[5].mxu0 }
 0x2b0   :  { %vm804_vm7 = vcmp.ge.f32.partialorder %v582_v6, 0.0  ;;  %v808_v8 = vmul.f32 0.1, %v582_v6 }
 0x2b1   :  { %v654_v9 = vpop.f32.mrb[4].mxu1 }
 0x2b2   :  { %v655_v10 = vadd.f32 %v654_v9, %v509_v4  ;;  %v3046_v11 = vpop.f32.mrb[5].mxu1  ;;  %v812_v12 = vsel %vm804_vm7, %v582_v6, %v808_v8 }
 0x2b3   :  { %833 = vrot.lane.b32.xlu1 %v812_v12, %s3511_s17  ;;  %817 = vst.msk [vmem:[%s4176_s11] sm:$0xff] %vm816_vm8, %v812_v12 }
 0x2b4   :  { %v809_v13 = vmul.f32 0.1, %v655_v10  ;;  %vm805_vm9 = vcmp.ge.f32.partialorder %v655_v10, 0.0 }
 0x2b6   :  { %v813_v14 = vsel %vm805_vm9, %v655_v10, %v809_v13  ;;  %v1283_v13 = vld [vmem:[%s4179_s6] sm:$0xff] }
 0x2b7   :  { %818 = vst.msk [vmem:[%s4176_s11 + $0x8] sm:$0xff] %vm816_vm8, %v813_v14  ;;  %835 = vrot.lane.b32.xlu1 %v813_v14, %s3511_s17  ;;  %v1284_v14 = vld [vmem:[%s4179_s6 + $0x8] sm:$0x7] }
 0x2bd   :  { %v727_v15 = vpop.f32.mrb[6].mxu0 }
 0x2be   :  { %v728_v16 = vadd.f32 %v727_v15, %v509_v4  ;;  %v3057_v17 = vpop.f32.mrb[7].mxu0 }
 0x2c0   :  { %v810_v18 = vmul.f32 0.1, %v728_v16  ;;  %vm806_vm10 = vcmp.ge.f32.partialorder %v728_v16, 0.0 }
 0x2c1   :  { %v800_v19 = vpop.f32.mrb[6].mxu1 }
 0x2c2   :  { %v801_v20 = vadd.f32 %v800_v19, %v509_v4  ;;  %v814_v21 = vsel %vm806_vm10, %v728_v16, %v810_v18  ;;  %v3068_v22 = vpop.f32.mrb[7].mxu1  ;;  %v3357_v19 = vpack.c.bf16 %v1284_v14, %v1283_v13 }
 0x2c3   :  { %837 = vrot.lane.b32.xlu0 %v814_v21, %s3511_s17  ;;  %819 = vst.msk [vmem:[%s4176_s11 + $0x10] sm:$0xff] %vm816_vm8, %v814_v21  ;;  %v1286_v22 = vld [vmem:[%s4178_s5 + $0x8] sm:$0xff] }
 0x2c4   :  { %v811_v23 = vmul.f32 0.1, %v801_v20  ;;  %vm807_vm11 = vcmp.ge.f32.partialorder %v801_v20, 0.0 }
 0x2c6   :  { %v815_v24 = vsel %vm807_vm11, %v801_v20, %v811_v23  ;;  %vm1698_vm11 = vcmask 48144  }
 0x2c7   :  { %820 = vst.msk [vmem:[%s4176_s11 + $0x18] sm:$0xff] %vm816_vm8, %v815_v24  ;;  %839 = vrot.lane.b32.xlu1 %v815_v24, %s3511_s17 }
 0x325   :  { %v834_v25 = vpop.permute.xlu1 %833 }
 0x326   :  { %846 = vst.msk [vmem:[#allocation3] sm:$0xff] %vm845_vm12, %v834_v25 }
 0x329   :  { %v836_v26 = vpop.permute.xlu1 %835 }
 0x32a   :  { %847 = vst.msk [vmem:[#allocation3 + $0x10] sm:$0xff] %vm845_vm12, %v836_v26 }
 0x32d   :  { %v850_v27 = vld [vmem:[#allocation3] sm:$0xff] }
 0x32e   :  { %854 = vst.msk [vmem:[#allocation4] sm:$0xff] %vm816_vm8, %v850_v27  ;;  %866 = vrot.lane.b32.xlu0 %v850_v27, %s3512_s22 }
 0x32f   :  { %2308 = vst.msk [vmem:[#allocation3] sm:$0xff] %vm44_vm0, %v3510_v2 }
 0x331   :  { %v851_v28 = vld [vmem:[#allocation3 + $0x10] sm:$0xff] }
 0x332   :  { %855 = vst.msk [vmem:[#allocation4 + $0x50] sm:$0xff] %vm816_vm8, %v851_v28  ;;  %890 = vrot.lane.b32.xlu0 %v850_v27, %s3513_s0  ;;  %868 = vrot.lane.b32.xlu1 %v851_v28, %s3512_s22 }
 0x333   :  { %2310 = vst.msk [vmem:[#allocation3 + $0x10] sm:$0xff] %vm44_vm0, %v3510_v2 }
 0x335   :  { %v838_v29 = vpop.permute.xlu0 %837  ;;  %v954_v40 = vld [vmem:[#allocation4] sm:$0xff] }
 0x336   :  { %848 = vst.msk [vmem:[#allocation3 + $0x20] sm:$0xff] %vm845_vm12, %v838_v29  ;;  %914 = vrot.lane.b32.xlu0 %v850_v27, %s3514_s23  ;;  %892 = vrot.lane.b32.xlu1 %v851_v28, %s3513_s0 }
 0x339   :  { %v840_v31 = vpop.permute.xlu1 %839  ;;  %v959_v45 = vld [vmem:[#allocation4 + $0x50] sm:$0xff] }
 0x33a   :  { %849 = vst.msk [vmem:[#allocation3 + $0x30] sm:$0xff] %vm845_vm12, %v840_v31  ;;  %938 = vrot.lane.b32.xlu0 %v850_v27, %s3516_s24  ;;  %916 = vrot.lane.b32.xlu1 %v851_v28, %s3514_s23  ;;  %vm1969_vm12 = vcmask 654336  }
 0x33d   :  { %v852_v32 = vld [vmem:[#allocation3 + $0x20] sm:$0xff] }
 0x33e   :  { %856 = vst.msk [vmem:[#allocation4 + $0xa0] sm:$0xff] %vm816_vm8, %v852_v32  ;;  %870 = vrot.lane.b32.xlu0 %v852_v32, %s3512_s22  ;;  %940 = vrot.lane.b32.xlu1 %v851_v28, %s3516_s24 }
 0x33f   :  { %2312 = vst.msk [vmem:[#allocation3 + $0x20] sm:$0xff] %vm44_vm0, %v3510_v2 }
 0x341   :  { %v853_v33 = vld [vmem:[#allocation3 + $0x30] sm:$0xff] }
 0x342   :  { %857 = vst.msk [vmem:[#allocation4 + $0xf0] sm:$0xff] %vm816_vm8, %v853_v33  ;;  %894 = vrot.lane.b32.xlu0 %v852_v32, %s3513_s0  ;;  %872 = vrot.lane.b32.xlu1 %v853_v33, %s3512_s22 }
 0x343   :  { %2314 = vst.msk [vmem:[#allocation3 + $0x30] sm:$0xff] %vm44_vm0, %v3510_v2  ;;  %vm3857_vm0 = vmpackc.low %vm1303_vm14, %vm3519_vm15 }
 0x345   :  { %v964_v0 = vld [vmem:[#allocation4 + $0xa0] sm:$0xff] }
 0x346   :  { %918 = vrot.lane.b32.xlu0 %v852_v32, %s3514_s23  ;;  %896 = vrot.lane.b32.xlu1 %v853_v33, %s3513_s0 }
 0x349   :  { %v969_v6 = vld [vmem:[#allocation4 + $0xf0] sm:$0xff] }
 0x34a   :  { %942 = vrot.lane.b32.xlu0 %v852_v32, %s3516_s24  ;;  %920 = vrot.lane.b32.xlu1 %v853_v33, %s3514_s23 }
 0x34e   :  { %1289 = vperm.xlu0 %3508, %v1285_v34   ;;  %944 = vrot.lane.b32.xlu1 %v853_v33, %s3516_s24 }
 0x352   :  { %1294 = vperm.xlu1 %3509, %v1286_v22  }
 0x3a0   :  { %v867_v35 = vpop.permute.xlu0 %866 }
 0x3a1   :  { %878 = vst.msk [vmem:[#allocation4 + $0x8] sm:$0xff] %vm816_vm8, %v867_v35 }
 0x3a4   :  { %v891_v36 = vpop.permute.xlu0 %890  ;;  %v869_v37 = vpop.permute.xlu1 %868 }
 0x3a5   :  { %902 = vst.msk [vmem:[#allocation4 + $0x10] sm:$0xff] %vm816_vm8, %v891_v36  ;;  %879 = vst.msk [vmem:[#allocation4 + $0x58] sm:$0xff] %vm816_vm8, %v869_v37 }
 0x3a8   :  { %v915_v38 = vpop.permute.xlu0 %914  ;;  %v893_v39 = vpop.permute.xlu1 %892  ;;  %v955_v41 = vld [vmem:[#allocation4 + $0x8] sm:$0xff] }
 0x3a9   :  { %926 = vst.msk [vmem:[#allocation4 + $0x18] sm:$0xff] %vm816_vm8, %v915_v38  ;;  %903 = vst.msk [vmem:[#allocation4 + $0x60] sm:$0xff] %vm816_vm8, %v893_v39  ;;  %v3325_v42 = vpack.c.bf16 %v955_v41, %v954_v40 }
 0x3ab   :  { %3326 = vmatprep.subr.bf16.mxu0 %v3325_v42 }
 0x3ac   :  { %v939_v43 = vpop.permute.xlu0 %938  ;;  %3328 = vmatpush3.bf16.msra.mxu0 %v3325_v42  ;;  %v917_v44 = vpop.permute.xlu1 %916  ;;  %v960_v46 = vld [vmem:[#allocation4 + $0x58] sm:$0xff]  ;;  %v956_v50 = vld [vmem:[#allocation4 + $0x10] sm:$0xff] }
 0x3ad   :  { %950 = vst.msk [vmem:[#allocation4 + $0x20] sm:$0xff] %vm816_vm8, %v939_v43  ;;  %927 = vst.msk [vmem:[#allocation4 + $0x68] sm:$0xff] %vm816_vm8, %v917_v44  ;;  %v3333_v47 = vpack.c.bf16 %v960_v46, %v959_v45 }
 0x3af   :  { %3334 = vmatprep.subr.bf16.mxu1 %v3333_v47 }
 0x3b0   :  { %v871_v48 = vpop.permute.xlu0 %870  ;;  %3336 = vmatpush3.bf16.msra.mxu1 %v3333_v47  ;;  %v941_v49 = vpop.permute.xlu1 %940  ;;  %v957_v51 = vld [vmem:[#allocation4 + $0x18] sm:$0xff]  ;;  %v961_v57 = vld [vmem:[#allocation4 + $0x60] sm:$0xff] }
 0x3b1   :  { %880 = vst.msk [vmem:[#allocation4 + $0xa8] sm:$0xff] %vm816_vm8, %v871_v48  ;;  %951 = vst.msk [vmem:[#allocation4 + $0x70] sm:$0xff] %vm816_vm8, %v941_v49  ;;  %v3329_v52 = vpack.c.bf16 %v957_v51, %v956_v50 }
 0x3b3   :  { %3330 = vmatprep.subr.bf16.mxu0 %v3329_v52 }
 0x3b4   :  { %v895_v53 = vpop.permute.xlu0 %894  ;;  %3332 = vmatpush3.bf16.msra.mxu0 %v3329_v52  ;;  %v873_v55 = vpop.permute.xlu1 %872  ;;  %v958_v56 = vld [vmem:[#allocation4 + $0x20] sm:$0xff]  ;;  %v962_v58 = vld [vmem:[#allocation4 + $0x68] sm:$0xff] }
 0x3b5   :  { %904 = vst.msk [vmem:[#allocation4 + $0xb0] sm:$0xff] %vm816_vm8, %v895_v53  ;;  %881 = vst.msk [vmem:[#allocation4 + $0xf8] sm:$0xff] %vm816_vm8, %v873_v55  ;;  %3077 = vmatprep.subr.mxu0 %v958_v56  ;;  %v3337_v59 = vpack.c.bf16 %v962_v58, %v961_v57 }
 0x3b7   :  { %3338 = vmatprep.subr.bf16.mxu1 %v3337_v59 }
 0x3b8   :  { %v919_v61 = vpop.permute.xlu0 %918  ;;  %3078 = vmatpush3.msra.mxu0 %v958_v56  ;;  %3340 = vmatpush3.bf16.msra.mxu1 %v3337_v59  ;;  %v897_v62 = vpop.permute.xlu1 %896  ;;  %v963_v63 = vld [vmem:[#allocation4 + $0x70] sm:$0xff]  ;;  %v965_v1 = vld [vmem:[#allocation4 + $0xa8] sm:$0xff] }
 0x3b9   :  { %928 = vst.msk [vmem:[#allocation4 + $0xb8] sm:$0xff] %vm816_vm8, %v919_v61  ;;  %905 = vst.msk [vmem:[#allocation4 + $0x100] sm:$0xff] %vm816_vm8, %v897_v62  ;;  %3080 = vmatmul.mubr.msk.f32.vlgmr.msra.gmra.mrb[8].mxu0 %vm976_vm13, %v975_v60  ;;  %3090 = vmatprep.subr.mxu1 %v963_v63  ;;  %v3341_v3 = vpack.c.bf16 %v965_v1, %v964_v0 }
 0x3ba   :  { %3105 = vmatprep.mubr.msk.f32.mxu0 %vm976_vm13, %v3799_v30 }
 0x3bb   :  { %3342 = vmatprep.subr.bf16.mxu0 %v3341_v3 }
 0x3bc   :  { %v943_v4 = vpop.permute.xlu0 %942  ;;  %3091 = vmatpush3.msra.mxu1 %v963_v63  ;;  %3344 = vmatpush3.bf16.msra.mxu0 %v3341_v3  ;;  %v921_v5 = vpop.permute.xlu1 %920  ;;  %v970_v7 = vld [vmem:[#allocation4 + $0xf8] sm:$0xff]  ;;  %v966_v10 = vld [vmem:[#allocation4 + $0xb0] sm:$0xff] }
 0x3bd   :  { %952 = vst.msk [vmem:[#allocation4 + $0xc0] sm:$0xff] %vm816_vm8, %v943_v4  ;;  %929 = vst.msk [vmem:[#allocation4 + $0x108] sm:$0xff] %vm816_vm8, %v921_v5  ;;  %3093 = vmatmul.mubr.msk.f32.vlgmr.msra.gmra.mrb[8].mxu1 %vm976_vm13, %v975_v60  ;;  %v3349_v8 = vpack.c.bf16 %v970_v7, %v969_v6 }
 0x3be   :  { %3118 = vmatprep.mubr.msk.f32.mxu1 %vm976_vm13, %v3799_v30 }
 0x3bf   :  { %3350 = vmatprep.subr.bf16.mxu1 %v3349_v8 }
 0x3c0   :  { %3352 = vmatpush3.bf16.msra.mxu1 %v3349_v8  ;;  %v945_v9 = vpop.permute.xlu1 %944  ;;  %v967_v11 = vld [vmem:[#allocation4 + $0xb8] sm:$0xff]  ;;  %v971_v16 = vld [vmem:[#allocation4 + $0x100] sm:$0xff] }
 0x3c1   :  { %953 = vst.msk [vmem:[#allocation4 + $0x110] sm:$0xff] %vm816_vm8, %v945_v9  ;;  %v3345_v12 = vpack.c.bf16 %v967_v11, %v966_v10 }
 0x3c3   :  { %3346 = vmatprep.subr.bf16.mxu0 %v3345_v12 }
 0x3c4   :  { %3348 = vmatpush3.bf16.msra.mxu0 %v3345_v12  ;;  %v968_v15 = vld [vmem:[#allocation4 + $0xc0] sm:$0xff]  ;;  %v972_v17 = vld [vmem:[#allocation4 + $0x108] sm:$0xff] }
 0x3c5   :  { %3103 = vmatprep.subr.mxu0 %v968_v15  ;;  %v3353_v18 = vpack.c.bf16 %v972_v17, %v971_v16 }
 0x3c7   :  { %3354 = vmatprep.subr.bf16.mxu1 %v3353_v18 }
 0x3c8   :  { %3104 = vmatpush3.msra.mxu0 %v968_v15  ;;  %3356 = vmatpush3.bf16.msra.mxu1 %v3353_v18  ;;  %v973_v21 = vld [vmem:[#allocation4 + $0x110] sm:$0xff] }
 0x3c9   :  { %3106 = vmatmul.mubr.msk.f32.vlgmr.msra.gmra.mrb[10].mxu0 %vm976_vm13, %v975_v60  ;;  %3116 = vmatprep.subr.mxu1 %v973_v21 }
 0x3ca   :  { %3359 = vmatprep.subr.msk.bf16.mxu0 %vm3857_vm0, %v3357_v19 }
 0x3cb   :  { %3362 = vmatpush3.bf16.msk.msra.mxu0 %vm3857_vm0, %v3357_v19 }
 0x3cc   :  { %3117 = vmatpush3.msra.mxu1 %v973_v21  ;;  %3371 = vmatprep.subr.msk.bf16.mxu0 %vm3857_vm0, %v3357_v19 }
 0x3cd   :  { %3119 = vmatmul.mubr.msk.f32.vlgmr.msra.gmra.mrb[10].mxu1 %vm976_vm13, %v975_v60  ;;  %3365 = vmatprep.subr.msk.bf16.mxu1 %vm3857_vm0, %v3357_v19  ;;  %v1290_v33 = vpop.permute.xlu0 %1289 }
 0x3ce   :  { %3368 = vmatpush3.bf16.msk.msra.mxu1 %vm3857_vm0, %v3357_v19 }
 0x3cf   :  { %3377 = vmatprep.subr.msk.bf16.mxu1 %vm3857_vm0, %v3357_v19 }
 0x3d1   :  { %v1295_v31 = vpop.permute.xlu1 %1294 }
 0x48c   :  { %v3081_v23 = vpop.f32.mrb[8].mxu0 }
 0x48d   :  { %v1049_v24 = vpop.f32.mrb[9].mxu0 }
 0x48e   :  { %3125 = vmatprep.mubr.msk.f32.mxu0 %vm816_vm8, %v1049_v24 }
 0x48f   :  { %3126 = vmatmul.mubr.msk.f32.vlgmr.msra.gmra.mrb[12].mxu0 %vm816_vm8, %v3081_v23 }
 0x490   :  { %v3094_v25 = vpop.f32.mrb[8].mxu1  ;;  %3374 = vmatpush3.bf16.msk.msra.mxu0 %vm3857_vm0, %v3357_v19 }
 0x491   :  { %v1124_v26 = vpop.f32.mrb[9].mxu1 }
 0x492   :  { %3132 = vmatprep.mubr.msk.f32.mxu1 %vm816_vm8, %v1124_v26  ;;  %v1958_v26 = vld [vmem:[%s4182_s8 + $0x8] sm:$0xff] }
 0x493   :  { %3133 = vmatmul.mubr.msk.f32.vlgmr.msra.gmra.mrb[12].mxu1 %vm816_vm8, %v3094_v25  ;;  %v3963_v25 = vld [vmem:[%s4181_s7] sm:$0xff] }
 0x494   :  { %3380 = vmatpush3.bf16.msk.msra.mxu1 %vm3857_vm0, %v3357_v19 }
 0x49c   :  { %v3107_v27 = vpop.f32.mrb[10].mxu0 }
 0x49d   :  { %v1199_v28 = vpop.f32.mrb[11].mxu0 }
 0x49e   :  { %3139 = vmatprep.mubr.msk.f32.mxu0 %vm816_vm8, %v1199_v28 }
 0x49f   :  { %3140 = vmatmul.mubr.msk.f32.vlgmr.msra.gmra.mrb[14].mxu0 %vm816_vm8, %v3107_v27  ;;  %v1957_v27 = vld [vmem:[%s4182_s8] sm:$0xff] }
 0x4a0   :  { %v3120_v29 = vpop.f32.mrb[10].mxu1  ;;  %3169 = vmatprep.mubr.msk.f32.mxu0 %vm1969_vm12, %v3963_v25 }
 0x4a1   :  { %v1274_v30 = vpop.f32.mrb[11].mxu1 }
 0x4a2   :  { %3146 = vmatprep.mubr.msk.f32.mxu1 %vm816_vm8, %v1274_v30 }
 0x4a3   :  { %3147 = vmatmul.mubr.msk.f32.vlgmr.msra.gmra.mrb[14].mxu1 %vm816_vm8, %v3120_v29 }
 0x4a4   :  { %3192 = vmatprep.mubr.msk.f32.mxu1 %vm1969_vm12, %v3963_v25 }
 0x562   :  { %v3127_v32 = vpop.f32.mrb[12].mxu0 }
 0x563   :  { %v1379_v34 = vadd.f32 %v3127_v32, %v1295_v31  ;;  %v1373_v35 = vpop.f32.mrb[13].mxu0 }
 0x564   :  { %v1374_v36 = vadd.f32 %v1373_v35, %v1290_v33 }
 0x565   :  { %vm1626_vm1 = vcmp.ge.f32.partialorder %v1379_v34, 0.0  ;;  %v1634_v37 = vmul.f32 0.1, %v1379_v34 }
 0x566   :  { %v1633_v38 = vmul.f32 0.1, %v1374_v36  ;;  %v3134_v39 = vpop.f32.mrb[12].mxu1  ;;  %vm1625_vm4 = vcmp.ge.f32.partialorder %v1374_v36, 0.0 }
 0x567   :  { %v1460_v40 = vadd.f32 %v3134_v39, %v1295_v31  ;;  %v1454_v41 = vpop.f32.mrb[13].mxu1  ;;  %v1642_v42 = vsel %vm1626_vm1, %v1379_v34, %v1634_v37 }
 0x568   :  { %v1455_v43 = vadd.f32 %v1454_v41, %v1290_v33  ;;  %1676 = vrot.lane.b32.xlu1 %v1642_v42, %s3511_s17  ;;  %1651 = vst.msk [vmem:[%s4180_s12 + $0x8] sm:$0xff] %vm1649_vm2, %v1642_v42  ;;  %v1641_v44 = vsel %vm1625_vm4, %v1374_v36, %v1633_v38 }
 0x569   :  { %v1636_v45 = vmul.f32 0.1, %v1460_v40  ;;  %1674 = vrot.lane.b32.xlu0 %v1641_v44, %s3511_s17  ;;  %1650 = vst.msk [vmem:[%s4180_s12] sm:$0xff] %vm1649_vm2, %v1641_v44  ;;  %vm1628_vm5 = vcmp.ge.f32.partialorder %v1460_v40, 0.0 }
 0x56a   :  { %v1635_v46 = vmul.f32 0.1, %v1455_v43  ;;  %vm1627_vm6 = vcmp.ge.f32.partialorder %v1455_v43, 0.0 }
 0x56b   :  { %v1644_v47 = vsel %vm1628_vm5, %v1460_v40, %v1636_v45 }
 0x56c   :  { %1653 = vst.msk [vmem:[%s4180_s12 + $0x18] sm:$0xff] %vm1649_vm2, %v1644_v47  ;;  %1680 = vrot.lane.b32.xlu1 %v1644_v47, %s3511_s17  ;;  %v1643_v48 = vsel %vm1627_vm6, %v1455_v43, %v1635_v46 }
 0x56d   :  { %1678 = vrot.lane.b32.xlu0 %v1643_v48, %s3511_s17  ;;  %1652 = vst.msk [vmem:[%s4180_s12 + $0x10] sm:$0xff] %vm1649_vm2, %v1643_v48 }
 0x572   :  { %v3141_v49 = vpop.f32.mrb[14].mxu0 }
 0x573   :  { %v1541_v50 = vadd.f32 %v3141_v49, %v1295_v31  ;;  %v1535_v51 = vpop.f32.mrb[15].mxu0 }
 0x574   :  { %v1536_v52 = vadd.f32 %v1535_v51, %v1290_v33 }
 0x575   :  { %v1638_v53 = vmul.f32 0.1, %v1541_v50  ;;  %vm1630_vm7 = vcmp.ge.f32.partialorder %v1541_v50, 0.0 }
 0x576   :  { %v1637_v55 = vmul.f32 0.1, %v1536_v52  ;;  %v3148_v56 = vpop.f32.mrb[14].mxu1  ;;  %vm1629_vm8 = vcmp.ge.f32.partialorder %v1536_v52, 0.0 }
 0x577   :  { %v1622_v57 = vadd.f32 %v3148_v56, %v1295_v31  ;;  %v1616_v58 = vpop.f32.mrb[15].mxu1  ;;  %v1646_v59 = vsel %vm1630_vm7, %v1541_v50, %v1638_v53  ;;  %vm2348_vm7 = vcmask 39944  }
 0x578   :  { %v1617_v60 = vadd.f32 %v1616_v58, %v1290_v33  ;;  %1655 = vst.msk [vmem:[%s4180_s12 + $0x28] sm:$0xff] %vm1649_vm2, %v1646_v59  ;;  %1684 = vrot.lane.b32.xlu1 %v1646_v59, %s3511_s17  ;;  %v1645_v61 = vsel %vm1629_vm8, %v1536_v52, %v1637_v55  ;;  %vm2504_vm8 = vcmask 392192  }
 0x579   :  { %v1640_v62 = vmul.f32 0.1, %v1622_v57  ;;  %1654 = vst.msk [vmem:[%s4180_s12 + $0x20] sm:$0xff] %vm1649_vm2, %v1645_v61  ;;  %1682 = vrot.lane.b32.xlu0 %v1645_v61, %s3511_s17  ;;  %vm1632_vm9 = vcmp.ge.f32.partialorder %v1622_v57, 0.0 }
 0x57a   :  { %v1639_v63 = vmul.f32 0.1, %v1617_v60  ;;  %vm1631_vm10 = vcmp.ge.f32.partialorder %v1617_v60, 0.0 }
 0x57b   :  { %v1648_v0 = vsel %vm1632_vm9, %v1622_v57, %v1640_v62 }
 0x57c   :  { %1657 = vst.msk [vmem:[%s4180_s12 + $0x38] sm:$0xff] %vm1649_vm2, %v1648_v0  ;;  %1688 = vrot.lane.b32.xlu1 %v1648_v0, %s3511_s17  ;;  %v1647_v1 = vsel %vm1631_vm10, %v1617_v60, %v1639_v63 }
 0x57d   :  { %1656 = vst.msk [vmem:[%s4180_s12 + $0x30] sm:$0xff] %vm1649_vm2, %v1647_v1  ;;  %1686 = vrot.lane.b32.xlu0 %v1647_v1, %s3511_s17 }
 0x5da   :  { %v1677_v3 = vpop.permute.xlu1 %1676 }
 0x5db   :  { %1700 = vst.msk [vmem:[#allocation2 + $0x8] sm:$0xff] %vm1698_vm11, %v1677_v3  ;;  %v1675_v4 = vpop.permute.xlu0 %1674 }
 0x5dc   :  { %1699 = vst.msk [vmem:[#allocation2] sm:$0xff] %vm1698_vm11, %v1675_v4 }
 0x5de   :  { %v1681_v5 = vpop.permute.xlu1 %1680 }
 0x5df   :  { %1702 = vst.msk [vmem:[#allocation2 + $0x18] sm:$0xff] %vm1698_vm11, %v1681_v5  ;;  %v1679_v6 = vpop.permute.xlu0 %1678 }
 0x5e0   :  { %1701 = vst.msk [vmem:[#allocation2 + $0x10] sm:$0xff] %vm1698_vm11, %v1679_v6 }
 0x5e2   :  { %v1708_v7 = vld [vmem:[#allocation2 + $0x8] sm:$0xff] }
 0x5e3   :  { %1716 = vst.msk [vmem:[#allocation4 + $0x8] sm:$0xff] %vm1649_vm2, %v1708_v7  ;;  %v1707_v8 = vld [vmem:[#allocation2] sm:$0xff]  ;;  %1741 = vrot.lane.b32.xlu1 %v1708_v7, %s3512_s22 }
 0x5e4   :  { %1715 = vst.msk [vmem:[#allocation4] sm:$0xff] %vm1649_vm2, %v1707_v8  ;;  %1739 = vrot.lane.b32.xlu0 %v1707_v8, %s3512_s22 }
 0x5e6   :  { %v1710_v9 = vld [vmem:[#allocation2 + $0x18] sm:$0xff] }
 0x5e7   :  { %1718 = vst.msk [vmem:[#allocation4 + $0x58] sm:$0xff] %vm1649_vm2, %v1710_v9  ;;  %v1709_v10 = vld [vmem:[#allocation2 + $0x10] sm:$0xff]  ;;  %1745 = vrot.lane.b32.xlu1 %v1710_v9, %s3512_s22 }
 0x5e8   :  { %1717 = vst.msk [vmem:[#allocation4 + $0x50] sm:$0xff] %vm1649_vm2, %v1709_v10  ;;  %1743 = vrot.lane.b32.xlu0 %v1709_v10, %s3512_s22 }
 0x5ea   :  { %v1685_v11 = vpop.permute.xlu1 %1684  ;;  %v1916_v12 = vld [vmem:[#allocation4 + $0x8] sm:$0xff] }
 0x5eb   :  { %1704 = vst.msk [vmem:[#allocation2 + $0x28] sm:$0xff] %vm1698_vm11, %v1685_v11  ;;  %v1683_v13 = vpop.permute.xlu0 %1682  ;;  %1789 = vrot.lane.b32.xlu1 %v1708_v7, %s3513_s0  ;;  %v1915_v14 = vld [vmem:[#allocation4] sm:$0xff] }
 0x5ec   :  { %1703 = vst.msk [vmem:[#allocation2 + $0x20] sm:$0xff] %vm1698_vm11, %v1683_v13  ;;  %1787 = vrot.lane.b32.xlu0 %v1707_v8, %s3513_s0  ;;  %v3381_v15 = vpack.c.bf16 %v1916_v12, %v1915_v14 }
 0x5ee   :  { %3382 = vmatprep.subr.bf16.mxu0 %v3381_v15  ;;  %v1689_v16 = vpop.permute.xlu1 %1688  ;;  %v1926_v17 = vld [vmem:[#allocation4 + $0x58] sm:$0xff] }
 0x5ef   :  { %1706 = vst.msk [vmem:[#allocation2 + $0x38] sm:$0xff] %vm1698_vm11, %v1689_v16  ;;  %v1687_v18 = vpop.permute.xlu0 %1686  ;;  %3384 = vmatpush3.bf16.msra.mxu0 %v3381_v15  ;;  %1793 = vrot.lane.b32.xlu1 %v1710_v9, %s3513_s0  ;;  %v1925_v19 = vld [vmem:[#allocation4 + $0x50] sm:$0xff] }
 0x5f0   :  { %1705 = vst.msk [vmem:[#allocation2 + $0x30] sm:$0xff] %vm1698_vm11, %v1687_v18  ;;  %1791 = vrot.lane.b32.xlu0 %v1709_v10, %s3513_s0  ;;  %v3401_v20 = vpack.c.bf16 %v1926_v17, %v1925_v19 }
 0x5f2   :  { %v1712_v21 = vld [vmem:[#allocation2 + $0x28] sm:$0xff]  ;;  %3402 = vmatprep.subr.bf16.mxu1 %v3401_v20 }
 0x5f3   :  { %1720 = vst.msk [vmem:[#allocation4 + $0xa8] sm:$0xff] %vm1649_vm2, %v1712_v21  ;;  %v1711_v22 = vld [vmem:[#allocation2 + $0x20] sm:$0xff]  ;;  %1837 = vrot.lane.b32.xlu1 %v1708_v7, %s3514_s23  ;;  %3404 = vmatpush3.bf16.msra.mxu1 %v3401_v20 }
 0x5f4   :  { %1719 = vst.msk [vmem:[#allocation4 + $0xa0] sm:$0xff] %vm1649_vm2, %v1711_v22  ;;  %1835 = vrot.lane.b32.xlu0 %v1707_v8, %s3514_s23 }
 0x5f6   :  { %v1714_v23 = vld [vmem:[#allocation2 + $0x38] sm:$0xff] }
 0x5f7   :  { %1722 = vst.msk [vmem:[#allocation4 + $0xf8] sm:$0xff] %vm1649_vm2, %v1714_v23  ;;  %v1713_v24 = vld [vmem:[#allocation2 + $0x30] sm:$0xff]  ;;  %1841 = vrot.lane.b32.xlu1 %v1710_v9, %s3514_s23 }
 0x5f8   :  { %1721 = vst.msk [vmem:[#allocation4 + $0xf0] sm:$0xff] %vm1649_vm2, %v1713_v24  ;;  %1839 = vrot.lane.b32.xlu0 %v1709_v10, %s3514_s23 }
 0x5fa   :  { %v1936_v5 = vld [vmem:[#allocation4 + $0xa8] sm:$0xff] }
 0x5fb   :  { %1885 = vrot.lane.b32.xlu1 %v1708_v7, %s3516_s24  ;;  %v1935_v4 = vld [vmem:[#allocation4 + $0xa0] sm:$0xff] }
 0x5fc   :  { %1883 = vrot.lane.b32.xlu0 %v1707_v8, %s3516_s24  ;;  %v3421_v8 = vpack.c.bf16 %v1936_v5, %v1935_v4 }
 0x5fe   :  { %v1946_v14 = vld [vmem:[#allocation4 + $0xf8] sm:$0xff] }
 0x5ff   :  { %1889 = vrot.lane.b32.xlu1 %v1710_v9, %s3516_s24  ;;  %v4014_v9 = vld [vmem:[%s4181_s7 + $0x8] sm:$0xff]  ;;  %v1945_v13 = vld [vmem:[#allocation4 + $0xf0] sm:$0xff]  ;;  %s3520_s7 = smov 1  }
 0x600   :  { %1887 = vrot.lane.b32.xlu0 %v1709_v10, %s3516_s24  ;;  %v3441_v17 = vpack.c.bf16 %v1946_v14, %v1945_v13 }
 0x603   :  { %1749 = vrot.lane.b32.xlu1 %v1712_v21, %s3512_s22 }
 0x604   :  { %1747 = vrot.lane.b32.xlu0 %v1711_v22, %s3512_s22 }
 0x607   :  { %1753 = vrot.lane.b32.xlu1 %v1714_v23, %s3512_s22 }
 0x608   :  { %1751 = vrot.lane.b32.xlu0 %v1713_v24, %s3512_s22 }
 0x60b   :  { %1797 = vrot.lane.b32.xlu1 %v1712_v21, %s3513_s0 }
 0x60c   :  { %1795 = vrot.lane.b32.xlu0 %v1711_v22, %s3513_s0 }
 0x60f   :  { %1801 = vrot.lane.b32.xlu1 %v1714_v23, %s3513_s0 }
 0x610   :  { %1799 = vrot.lane.b32.xlu0 %v1713_v24, %s3513_s0 }
 0x613   :  { %1845 = vrot.lane.b32.xlu1 %v1712_v21, %s3514_s23 }
 0x614   :  { %1843 = vrot.lane.b32.xlu0 %v1711_v22, %s3514_s23 }
 0x617   :  { %1849 = vrot.lane.b32.xlu1 %v1714_v23, %s3514_s23 }
 0x618   :  { %1847 = vrot.lane.b32.xlu0 %v1713_v24, %s3514_s23 }
 0x61b   :  { %1893 = vrot.lane.b32.xlu1 %v1712_v21, %s3516_s24 }
 0x61c   :  { %1891 = vrot.lane.b32.xlu0 %v1711_v22, %s3516_s24 }
 0x61f   :  { %1897 = vrot.lane.b32.xlu1 %v1714_v23, %s3516_s24 }
 0x620   :  { %1895 = vrot.lane.b32.xlu0 %v1713_v24, %s3516_s24 }
 0x623   :  { %1966 = vperm.xlu1 %3509, %v1958_v26  }
 0x624   :  { %1961 = vperm.xlu0 %3508, %v1957_v27  }
 0x655   :  { %v1742_v28 = vpop.permute.xlu1 %1741 }
 0x656   :  { %1764 = vst.msk [vmem:[#allocation4 + $0x18] sm:$0xff] %vm1649_vm2, %v1742_v28  ;;  %v1740_v29 = vpop.permute.xlu0 %1739 }
 0x657   :  { %1763 = vst.msk [vmem:[#allocation4 + $0x10] sm:$0xff] %vm1649_vm2, %v1740_v29 }
 0x659   :  { %v1746_v30 = vpop.permute.xlu1 %1745 }
 0x65a   :  { %1766 = vst.msk [vmem:[#allocation4 + $0x68] sm:$0xff] %vm1649_vm2, %v1746_v30  ;;  %v1744_v31 = vpop.permute.xlu0 %1743 }
 0x65b   :  { %1765 = vst.msk [vmem:[#allocation4 + $0x60] sm:$0xff] %vm1649_vm2, %v1744_v31 }
 0x65d   :  { %v1790_v32 = vpop.permute.xlu1 %1789  ;;  %v1918_v33 = vld [vmem:[#allocation4 + $0x18] sm:$0xff] }
 0x65e   :  { %1812 = vst.msk [vmem:[#allocation4 + $0x28] sm:$0xff] %vm1649_vm2, %v1790_v32  ;;  %v1788_v34 = vpop.permute.xlu0 %1787  ;;  %v1917_v35 = vld [vmem:[#allocation4 + $0x10] sm:$0xff] }
 0x65f   :  { %1811 = vst.msk [vmem:[#allocation4 + $0x20] sm:$0xff] %vm1649_vm2, %v1788_v34  ;;  %v3385_v36 = vpack.c.bf16 %v1918_v33, %v1917_v35 }
 0x661   :  { %3386 = vmatprep.subr.bf16.mxu0 %v3385_v36  ;;  %v1794_v37 = vpop.permute.xlu1 %1793  ;;  %v1928_v38 = vld [vmem:[#allocation4 + $0x68] sm:$0xff] }
 0x662   :  { %1814 = vst.msk [vmem:[#allocation4 + $0x78] sm:$0xff] %vm1649_vm2, %v1794_v37  ;;  %v1792_v39 = vpop.permute.xlu0 %1791  ;;  %3388 = vmatpush3.bf16.msra.mxu0 %v3385_v36  ;;  %v1927_v40 = vld [vmem:[#allocation4 + $0x60] sm:$0xff] }
 0x663   :  { %1813 = vst.msk [vmem:[#allocation4 + $0x70] sm:$0xff] %vm1649_vm2, %v1792_v39  ;;  %v3405_v41 = vpack.c.bf16 %v1928_v38, %v1927_v40 }
 0x665   :  { %3406 = vmatprep.subr.bf16.mxu1 %v3405_v41  ;;  %v1838_v42 = vpop.permute.xlu1 %1837  ;;  %v1920_v43 = vld [vmem:[#allocation4 + $0x28] sm:$0xff] }
 0x666   :  { %1860 = vst.msk [vmem:[#allocation4 + $0x38] sm:$0xff] %vm1649_vm2, %v1838_v42  ;;  %v1836_v44 = vpop.permute.xlu0 %1835  ;;  %3408 = vmatpush3.bf16.msra.mxu1 %v3405_v41  ;;  %v1919_v45 = vld [vmem:[#allocation4 + $0x20] sm:$0xff] }
 0x667   :  { %1859 = vst.msk [vmem:[#allocation4 + $0x30] sm:$0xff] %vm1649_vm2, %v1836_v44  ;;  %v3389_v46 = vpack.c.bf16 %v1920_v43, %v1919_v45 }
 0x669   :  { %3390 = vmatprep.subr.bf16.mxu0 %v3389_v46  ;;  %v1842_v47 = vpop.permute.xlu1 %1841  ;;  %v1930_v48 = vld [vmem:[#allocation4 + $0x78] sm:$0xff] }
 0x66a   :  { %1862 = vst.msk [vmem:[#allocation4 + $0x88] sm:$0xff] %vm1649_vm2, %v1842_v47  ;;  %v1840_v49 = vpop.permute.xlu0 %1839  ;;  %3392 = vmatpush3.bf16.msra.mxu0 %v3389_v46  ;;  %v1929_v50 = vld [vmem:[#allocation4 + $0x70] sm:$0xff] }
 0x66b   :  { %1861 = vst.msk [vmem:[#allocation4 + $0x80] sm:$0xff] %vm1649_vm2, %v1840_v49  ;;  %v3409_v51 = vpack.c.bf16 %v1930_v48, %v1929_v50 }
 0x66d   :  { %3410 = vmatprep.subr.bf16.mxu1 %v3409_v51  ;;  %v1886_v52 = vpop.permute.xlu1 %1885  ;;  %v1922_v53 = vld [vmem:[#allocation4 + $0x38] sm:$0xff] }
 0x66e   :  { %1908 = vst.msk [vmem:[#allocation4 + $0x48] sm:$0xff] %vm1649_vm2, %v1886_v52  ;;  %v1884_v55 = vpop.permute.xlu0 %1883  ;;  %3412 = vmatpush3.bf16.msra.mxu1 %v3409_v51  ;;  %v1921_v56 = vld [vmem:[#allocation4 + $0x30] sm:$0xff] }
 0x66f   :  { %1907 = vst.msk [vmem:[#allocation4 + $0x40] sm:$0xff] %vm1649_vm2, %v1884_v55  ;;  %v3393_v57 = vpack.c.bf16 %v1922_v53, %v1921_v56 }
 0x671   :  { %3394 = vmatprep.subr.bf16.mxu0 %v3393_v57  ;;  %v1890_v58 = vpop.permute.xlu1 %1889  ;;  %v1932_v59 = vld [vmem:[#allocation4 + $0x88] sm:$0xff] }
 0x672   :  { %1910 = vst.msk [vmem:[#allocation4 + $0x98] sm:$0xff] %vm1649_vm2, %v1890_v58  ;;  %v1888_v60 = vpop.permute.xlu0 %1887  ;;  %3396 = vmatpush3.bf16.msra.mxu0 %v3393_v57  ;;  %v1931_v61 = vld [vmem:[#allocation4 + $0x80] sm:$0xff] }
 0x673   :  { %1909 = vst.msk [vmem:[#allocation4 + $0x90] sm:$0xff] %vm1649_vm2, %v1888_v60  ;;  %v3413_v62 = vpack.c.bf16 %v1932_v59, %v1931_v61 }
 0x675   :  { %3414 = vmatprep.subr.bf16.mxu1 %v3413_v62  ;;  %v1750_v63 = vpop.permute.xlu1 %1749  ;;  %v1924_v0 = vld [vmem:[#allocation4 + $0x48] sm:$0xff] }
 0x676   :  { %1768 = vst.msk [vmem:[#allocation4 + $0xb8] sm:$0xff] %vm1649_vm2, %v1750_v63  ;;  %v1748_v1 = vpop.permute.xlu0 %1747  ;;  %3416 = vmatpush3.bf16.msra.mxu1 %v3413_v62  ;;  %v1923_v3 = vld [vmem:[#allocation4 + $0x40] sm:$0xff] }
 0x677   :  { %1767 = vst.msk [vmem:[#allocation4 + $0xb0] sm:$0xff] %vm1649_vm2, %v1748_v1  ;;  %v3397_v6 = vpack.c.bf16 %v1924_v0, %v1923_v3 }
 0x679   :  { %3398 = vmatprep.subr.bf16.mxu0 %v3397_v6  ;;  %v1754_v7 = vpop.permute.xlu1 %1753  ;;  %v1934_v10 = vld [vmem:[#allocation4 + $0x98] sm:$0xff] }
 0x67a   :  { %1770 = vst.msk [vmem:[#allocation4 + $0x108] sm:$0xff] %vm1649_vm2, %v1754_v7  ;;  %v1752_v11 = vpop.permute.xlu0 %1751  ;;  %3400 = vmatpush3.bf16.msra.mxu0 %v3397_v6  ;;  %v1933_v12 = vld [vmem:[#allocation4 + $0x90] sm:$0xff] }
 0x67b   :  { %1769 = vst.msk [vmem:[#allocation4 + $0x100] sm:$0xff] %vm1649_vm2, %v1752_v11  ;;  %3422 = vmatprep.subr.bf16.mxu0 %v3421_v8  ;;  %v3417_v15 = vpack.c.bf16 %v1934_v10, %v1933_v12 }
 0x67d   :  { %3170 = vmatmul.mubr.msk.f32.vlgmr.msra.gmra.mrb[16].mxu0 %vm1969_vm12, %v4014_v9  ;;  %3418 = vmatprep.subr.bf16.mxu1 %v3417_v15  ;;  %v1798_v16 = vpop.permute.xlu1 %1797  ;;  %v1938_v18 = vld [vmem:[#allocation4 + $0xb8] sm:$0xff] }
 0x67e   :  { %1816 = vst.msk [vmem:[#allocation4 + $0xc8] sm:$0xff] %vm1649_vm2, %v1798_v16  ;;  %v1796_v19 = vpop.permute.xlu0 %1795  ;;  %3420 = vmatpush3.bf16.msra.mxu1 %v3417_v15  ;;  %3424 = vmatpush3.bf16.msra.mxu0 %v3421_v8  ;;  %v1937_v20 = vld [vmem:[#allocation4 + $0xb0] sm:$0xff] }
 0x67f   :  { %1815 = vst.msk [vmem:[#allocation4 + $0xc0] sm:$0xff] %vm1649_vm2, %v1796_v19  ;;  %3442 = vmatprep.subr.bf16.mxu1 %v3441_v17  ;;  %v3425_v21 = vpack.c.bf16 %v1938_v18, %v1937_v20  ;;  %3215 = vmatprep.mubr.msk.f32.mxu0 %vm1969_vm12, %v3963_v25 }
 0x681   :  { %3193 = vmatmul.mubr.msk.f32.vlgmr.msra.gmra.mrb[16].mxu1 %vm1969_vm12, %v4014_v9  ;;  %3426 = vmatprep.subr.bf16.mxu0 %v3425_v21  ;;  %v1802_v22 = vpop.permute.xlu1 %1801  ;;  %v1948_v23 = vld [vmem:[#allocation4 + $0x108] sm:$0xff] }
 0x682   :  { %1818 = vst.msk [vmem:[#allocation4 + $0x118] sm:$0xff] %vm1649_vm2, %v1802_v22  ;;  %v1800_v24 = vpop.permute.xlu0 %1799  ;;  %3428 = vmatpush3.bf16.msra.mxu0 %v3425_v21  ;;  %3444 = vmatpush3.bf16.msra.mxu1 %v3441_v17  ;;  %v1947_v26 = vld [vmem:[#allocation4 + $0x100] sm:$0xff] }
 0x683   :  { %1817 = vst.msk [vmem:[#allocation4 + $0x110] sm:$0xff] %vm1649_vm2, %v1800_v24  ;;  %v3445_v27 = vpack.c.bf16 %v1948_v23, %v1947_v26  ;;  %3238 = vmatprep.mubr.msk.f32.mxu1 %vm1969_vm12, %v3963_v25  ;;  %v20_v26 = vstv %s4184_s10 }
 0x684   :  { %21 = vst [vmem:[#allocation5] sm:$0x1] %v20_v26 }
 0x685   :  { %3446 = vmatprep.subr.bf16.mxu1 %v3445_v27  ;;  %v1846_v28 = vpop.permute.xlu1 %1845  ;;  %v1940_v29 = vld [vmem:[#allocation4 + $0xc8] sm:$0xff] }
 0x686   :  { %1864 = vst.msk [vmem:[#allocation4 + $0xd8] sm:$0xff] %vm1649_vm2, %v1846_v28  ;;  %v1844_v30 = vpop.permute.xlu0 %1843  ;;  %3448 = vmatpush3.bf16.msra.mxu1 %v3445_v27  ;;  %v1939_v31 = vld [vmem:[#allocation4 + $0xc0] sm:$0xff] }
 0x687   :  { %1863 = vst.msk [vmem:[#allocation4 + $0xd0] sm:$0xff] %vm1649_vm2, %v1844_v30  ;;  %v3429_v32 = vpack.c.bf16 %v1940_v29, %v1939_v31 }
 0x689   :  { %3430 = vmatprep.subr.bf16.mxu0 %v3429_v32  ;;  %v1850_v33 = vpop.permute.xlu1 %1849  ;;  %v1950_v34 = vld [vmem:[#allocation4 + $0x118] sm:$0xff] }
 0x68a   :  { %1866 = vst.msk [vmem:[#allocation4 + $0x128] sm:$0xff] %vm1649_vm2, %v1850_v33  ;;  %v1848_v35 = vpop.permute.xlu0 %1847  ;;  %3432 = vmatpush3.bf16.msra.mxu0 %v3429_v32  ;;  %v1949_v36 = vld [vmem:[#allocation4 + $0x110] sm:$0xff] }
 0x68b   :  { %1865 = vst.msk [vmem:[#allocation4 + $0x120] sm:$0xff] %vm1649_vm2, %v1848_v35  ;;  %v3449_v25 = vpack.c.bf16 %v1950_v34, %v1949_v36 }
 0x68d   :  { %3450 = vmatprep.subr.bf16.mxu1 %v3449_v25  ;;  %v1894_v37 = vpop.permute.xlu1 %1893  ;;  %v1942_v38 = vld [vmem:[#allocation4 + $0xd8] sm:$0xff] }
 0x68e   :  { %1912 = vst.msk [vmem:[#allocation4 + $0xe8] sm:$0xff] %vm1649_vm2, %v1894_v37  ;;  %v1892_v39 = vpop.permute.xlu0 %1891  ;;  %3452 = vmatpush3.bf16.msra.mxu1 %v3449_v25  ;;  %v1941_v40 = vld [vmem:[#allocation4 + $0xd0] sm:$0xff] }
 0x68f   :  { %1911 = vst.msk [vmem:[#allocation4 + $0xe0] sm:$0xff] %vm1649_vm2, %v1892_v39  ;;  %v3433_v41 = vpack.c.bf16 %v1942_v38, %v1941_v40 }
 0x691   :  { %3434 = vmatprep.subr.bf16.mxu0 %v3433_v41  ;;  %v1898_v42 = vpop.permute.xlu1 %1897  ;;  %v1952_v43 = vld [vmem:[#allocation4 + $0x128] sm:$0xff] }
 0x692   :  { %1914 = vst.msk [vmem:[#allocation4 + $0x138] sm:$0xff] %vm1649_vm2, %v1898_v42  ;;  %v1896_v44 = vpop.permute.xlu0 %1895  ;;  %3436 = vmatpush3.bf16.msra.mxu0 %v3433_v41  ;;  %v1951_v45 = vld [vmem:[#allocation4 + $0x120] sm:$0xff] }
 0x693   :  { %1913 = vst.msk [vmem:[#allocation4 + $0x130] sm:$0xff] %vm1649_vm2, %v1896_v44  ;;  %v3453_v46 = vpack.c.bf16 %v1952_v43, %v1951_v45 }
 0x695   :  { %3454 = vmatprep.subr.bf16.mxu1 %v3453_v46  ;;  %v1944_v47 = vld [vmem:[#allocation4 + $0xe8] sm:$0xff] }
 0x696   :  { %3456 = vmatpush3.bf16.msra.mxu1 %v3453_v46  ;;  %v1943_v48 = vld [vmem:[#allocation4 + $0xe0] sm:$0xff] }
 0x697   :  { %v3437_v49 = vpack.c.bf16 %v1944_v47, %v1943_v48  ;;  %v2494_v48 = vld [vmem:[#allocation5] sm:$0x1] }
 0x699   :  { %3438 = vmatprep.subr.bf16.mxu0 %v3437_v49  ;;  %v1954_v50 = vld [vmem:[#allocation4 + $0x138] sm:$0xff] }
 0x69a   :  { %3440 = vmatpush3.bf16.msra.mxu0 %v3437_v49  ;;  %v1953_v51 = vld [vmem:[#allocation4 + $0x130] sm:$0xff] }
 0x69b   :  { %v3457_v52 = vpack.c.bf16 %v1954_v50, %v1953_v51  ;;  %3461 = vmatprep.subr.bf16.mxu0 %v3517_v54 }
 0x69d   :  { %3216 = vmatmul.mubr.msk.f32.vlgmr.msra.gmra.mrb[18].mxu0 %vm1969_vm12, %v4014_v9  ;;  %3458 = vmatprep.subr.bf16.mxu1 %v3457_v52 }
 0x69e   :  { %3460 = vmatpush3.bf16.msra.mxu1 %v3457_v52  ;;  %3253 = vmatprep.mubr.msk.f32.mxu0 %vm3515_vm3, %v3510_v2 }
 0x69f   :  { %3470 = vmatprep.subr.bf16.mxu1 %v3517_v54 }
 0x6a1   :  { %3239 = vmatmul.mubr.msk.f32.vlgmr.msra.gmra.mrb[18].mxu1 %vm1969_vm12, %v4014_v9 }
 0x6a2   :  { %3268 = vmatprep.mubr.msk.f32.mxu1 %vm3515_vm3, %v3510_v2  ;;  %v1967_v53 = vpop.permute.xlu1 %1966 }
 0x6a3   :  { %v1962_v56 = vpop.permute.xlu0 %1961 }
 0x750   :  { %v3171_v55 = vpop.f32.mrb[16].mxu0 }
 0x751   :  { %v2048_v57 = vadd.f32 %v3171_v55, %v1967_v53  ;;  %v2042_v58 = vpop.f32.mrb[17].mxu0 }
 0x752   :  { %v2043_v59 = vadd.f32 %v2042_v58, %v1962_v56 }
 0x753   :  { %v2285_v60 = vmul.f32 0.1, %v2048_v57  ;;  %vm2277_vm13 = vcmp.ge.f32.partialorder %v2048_v57, 0.0 }
 0x754   :  { %v2284_v61 = vmul.f32 0.1, %v2043_v59  ;;  %v3194_v62 = vpop.f32.mrb[16].mxu1  ;;  %vm2276_vm14 = vcmp.ge.f32.partialorder %v2043_v59, 0.0 }
 0x755   :  { %v2123_v63 = vadd.f32 %v3194_v62, %v1967_v53  ;;  %v2117_v0 = vpop.f32.mrb[17].mxu1  ;;  %v2293_v1 = vsel %vm2277_vm13, %v2048_v57, %v2285_v60 }
 0x756   :  { %v2118_v3 = vadd.f32 %v2117_v0, %v1962_v56  ;;  %2326 = vrot.lane.b32.xlu1 %v2293_v1, %s3520_s7  ;;  %2301 = vst.msk [vmem:[%s4183_s13 + $0x8] sm:$0xff] %vm1649_vm2, %v2293_v1  ;;  %v2292_v4 = vsel %vm2276_vm14, %v2043_v59, %v2284_v61 }
 0x757   :  { %v2287_v5 = vmul.f32 0.1, %v2123_v63  ;;  %2324 = vrot.lane.b32.xlu0 %v2292_v4, %s3520_s7  ;;  %2300 = vst.msk [vmem:[%s4183_s13] sm:$0xff] %vm1649_vm2, %v2292_v4  ;;  %vm2279_vm15 = vcmp.ge.f32.partialorder %v2123_v63, 0.0 }
 0x758   :  { %v2286_v6 = vmul.f32 0.1, %v2118_v3  ;;  %vm2278_vm0 = vcmp.ge.f32.partialorder %v2118_v3, 0.0 }
 0x759   :  { %v2295_v7 = vsel %vm2279_vm15, %v2123_v63, %v2287_v5 }
 0x75a   :  { %2303 = vst.msk [vmem:[%s4183_s13 + $0x18] sm:$0xff] %vm1649_vm2, %v2295_v7  ;;  %2330 = vrot.lane.b32.xlu1 %v2295_v7, %s3520_s7  ;;  %v2294_v8 = vsel %vm2278_vm0, %v2118_v3, %v2286_v6  ;;  %v2493_v6 = vld [vmem:[%s4185_s9] sm:$0x1] }
 0x75b   :  { %2328 = vrot.lane.b32.xlu0 %v2294_v8, %s3520_s7  ;;  %2302 = vst.msk [vmem:[%s4183_s13 + $0x10] sm:$0xff] %vm1649_vm2, %v2294_v8 }
 0x770   :  { %v3217_v9 = vpop.f32.mrb[18].mxu0 }
 0x771   :  { %v2198_v10 = vadd.f32 %v3217_v9, %v1967_v53  ;;  %v2192_v11 = vpop.f32.mrb[19].mxu0 }
 0x772   :  { %v2193_v12 = vadd.f32 %v2192_v11, %v1962_v56 }
 0x773   :  { %v2289_v13 = vmul.f32 0.1, %v2198_v10  ;;  %vm2281_vm1 = vcmp.ge.f32.partialorder %v2198_v10, 0.0 }
 0x774   :  { %v2288_v14 = vmul.f32 0.1, %v2193_v12  ;;  %v3240_v15 = vpop.f32.mrb[18].mxu1  ;;  %vm2280_vm4 = vcmp.ge.f32.partialorder %v2193_v12, 0.0 }
 0x775   :  { %v2273_v16 = vadd.f32 %v3240_v15, %v1967_v53  ;;  %v2267_v17 = vpop.f32.mrb[19].mxu1  ;;  %v2297_v18 = vsel %vm2281_vm1, %v2198_v10, %v2289_v13 }
 0x776   :  { %v2268_v19 = vadd.f32 %v2267_v17, %v1962_v56  ;;  %2305 = vst.msk [vmem:[%s4183_s13 + $0x28] sm:$0xff] %vm1649_vm2, %v2297_v18  ;;  %2334 = vrot.lane.b32.xlu1 %v2297_v18, %s3520_s7  ;;  %v2296_v20 = vsel %vm2280_vm4, %v2193_v12, %v2288_v14 }
 0x777   :  { %v2291_v21 = vmul.f32 0.1, %v2273_v16  ;;  %2332 = vrot.lane.b32.xlu0 %v2296_v20, %s3520_s7  ;;  %2304 = vst.msk [vmem:[%s4183_s13 + $0x20] sm:$0xff] %vm1649_vm2, %v2296_v20  ;;  %vm2283_vm5 = vcmp.ge.f32.partialorder %v2273_v16, 0.0 }
 0x778   :  { %v2290_v22 = vmul.f32 0.1, %v2268_v19  ;;  %vm2282_vm6 = vcmp.ge.f32.partialorder %v2268_v19, 0.0 }
 0x779   :  { %v2299_v23 = vsel %vm2283_vm5, %v2273_v16, %v2291_v21 }
 0x77a   :  { %2307 = vst.msk [vmem:[%s4183_s13 + $0x38] sm:$0xff] %vm1649_vm2, %v2299_v23  ;;  %2338 = vrot.lane.b32.xlu1 %v2299_v23, %s3520_s7  ;;  %v2298_v24 = vsel %vm2282_vm6, %v2268_v19, %v2290_v22 }
 0x77b   :  { %2336 = vrot.lane.b32.xlu0 %v2298_v24, %s3520_s7  ;;  %2306 = vst.msk [vmem:[%s4183_s13 + $0x30] sm:$0xff] %vm1649_vm2, %v2298_v24 }
 0x7c8   :  { %v2327_v27 = vpop.permute.xlu1 %2326 }
 0x7c9   :  { %2350 = vst.msk [vmem:[#allocation3 + $0x8] sm:$0xff] %vm2348_vm7, %v2327_v27  ;;  %v2325_v28 = vpop.permute.xlu0 %2324 }
 0x7ca   :  { %2349 = vst.msk [vmem:[#allocation3] sm:$0xff] %vm2348_vm7, %v2325_v28 }
 0x7cc   :  { %v2331_v29 = vpop.permute.xlu1 %2330 }
 0x7cd   :  { %2352 = vst.msk [vmem:[#allocation3 + $0x18] sm:$0xff] %vm2348_vm7, %v2331_v29  ;;  %v2329_v30 = vpop.permute.xlu0 %2328 }
 0x7ce   :  { %2351 = vst.msk [vmem:[#allocation3 + $0x10] sm:$0xff] %vm2348_vm7, %v2329_v30 }
 0x7d0   :  { %v2358_v31 = vld [vmem:[#allocation3 + $0x8] sm:$0xff] }
 0x7d1   :  { %2366 = vst.msk [vmem:[#allocation4 + $0x8] sm:$0xff] %vm1649_vm2, %v2358_v31  ;;  %v2357_v32 = vld [vmem:[#allocation3] sm:$0xff]  ;;  %2391 = vrot.lane.b32.xlu1 %v2358_v31, %s3512_s22 }
 0x7d2   :  { %2365 = vst.msk [vmem:[#allocation4] sm:$0xff] %vm1649_vm2, %v2357_v32  ;;  %2389 = vrot.lane.b32.xlu0 %v2357_v32, %s3512_s22 }
 0x7d4   :  { %v2360_v33 = vld [vmem:[#allocation3 + $0x18] sm:$0xff] }
 0x7d5   :  { %2368 = vst.msk [vmem:[#allocation4 + $0x58] sm:$0xff] %vm1649_vm2, %v2360_v33  ;;  %v2359_v34 = vld [vmem:[#allocation3 + $0x10] sm:$0xff]  ;;  %2395 = vrot.lane.b32.xlu1 %v2360_v33, %s3512_s22 }
 0x7d6   :  { %2367 = vst.msk [vmem:[#allocation4 + $0x50] sm:$0xff] %vm1649_vm2, %v2359_v34  ;;  %2393 = vrot.lane.b32.xlu0 %v2359_v34, %s3512_s22 }
 0x7d8   :  { %v2470_v35 = vld [vmem:[#allocation4 + $0x8] sm:$0xff] }
 0x7d9   :  { %2439 = vrot.lane.b32.xlu1 %v2358_v31, %s3513_s0  ;;  %v2469_v36 = vld [vmem:[#allocation4] sm:$0xff] }
 0x7da   :  { %2437 = vrot.lane.b32.xlu0 %v2357_v32, %s3513_s0  ;;  %v3462_v25 = vpack.c.bf16 %v2470_v35, %v2469_v36 }
 0x7dc   :  { %3463 = vmatpush3.bf16.msra.mxu0 %v3462_v25  ;;  %v2476_v37 = vld [vmem:[#allocation4 + $0x58] sm:$0xff] }
 0x7dd   :  { %2443 = vrot.lane.b32.xlu1 %v2360_v33, %s3513_s0  ;;  %v2475_v38 = vld [vmem:[#allocation4 + $0x50] sm:$0xff]  ;;  %3464 = vmatprep.subr.bf16.mxu0 %v3517_v54 }
 0x7de   :  { %2441 = vrot.lane.b32.xlu0 %v2359_v34, %s3513_s0  ;;  %v3471_v39 = vpack.c.bf16 %v2476_v37, %v2475_v38  ;;  %v2500_v34 = vlaneseq }
 0x7e0   :  { %3472 = vmatpush3.bf16.msra.mxu1 %v3471_v39  ;;  %v2501_v35 = vshrl.u32 %v2500_v34, 7 }
 0x7e1   :  { %3473 = vmatprep.subr.bf16.mxu1 %v3517_v54 }
 0x7e2   :  { %v2502_v36 = vsub.s32 0, %v2501_v35 }
 0x7e8   :  { %v2335_v40 = vpop.permute.xlu1 %2334 }
 0x7e9   :  { %2354 = vst.msk [vmem:[#allocation3 + $0x28] sm:$0xff] %vm2348_vm7, %v2335_v40  ;;  %v2333_v41 = vpop.permute.xlu0 %2332 }
 0x7ea   :  { %2353 = vst.msk [vmem:[#allocation3 + $0x20] sm:$0xff] %vm2348_vm7, %v2333_v41 }
 0x7ec   :  { %v2339_v42 = vpop.permute.xlu1 %2338 }
 0x7ed   :  { %2356 = vst.msk [vmem:[#allocation3 + $0x38] sm:$0xff] %vm2348_vm7, %v2339_v42  ;;  %v2337_v43 = vpop.permute.xlu0 %2336 }
 0x7ee   :  { %2355 = vst.msk [vmem:[#allocation3 + $0x30] sm:$0xff] %vm2348_vm7, %v2337_v43 }
 0x7f0   :  { %v2362_v44 = vld [vmem:[#allocation3 + $0x28] sm:$0xff] }
 0x7f1   :  { %2370 = vst.msk [vmem:[#allocation4 + $0xa8] sm:$0xff] %vm1649_vm2, %v2362_v44  ;;  %v2361_v45 = vld [vmem:[#allocation3 + $0x20] sm:$0xff]  ;;  %2399 = vrot.lane.b32.xlu1 %v2362_v44, %s3512_s22 }
 0x7f2   :  { %2369 = vst.msk [vmem:[#allocation4 + $0xa0] sm:$0xff] %vm1649_vm2, %v2361_v45  ;;  %2397 = vrot.lane.b32.xlu0 %v2361_v45, %s3512_s22 }
 0x7f4   :  { %v2364_v46 = vld [vmem:[#allocation3 + $0x38] sm:$0xff] }
 0x7f5   :  { %2372 = vst.msk [vmem:[#allocation4 + $0xf8] sm:$0xff] %vm1649_vm2, %v2364_v46  ;;  %v2363_v47 = vld [vmem:[#allocation3 + $0x30] sm:$0xff]  ;;  %2403 = vrot.lane.b32.xlu1 %v2364_v46, %s3512_s22 }
 0x7f6   :  { %2371 = vst.msk [vmem:[#allocation4 + $0xf0] sm:$0xff] %vm1649_vm2, %v2363_v47  ;;  %2401 = vrot.lane.b32.xlu0 %v2363_v47, %s3512_s22 }
 0x7f8   :  { %v2482_v5 = vld [vmem:[#allocation4 + $0xa8] sm:$0xff] }
 0x7f9   :  { %2447 = vrot.lane.b32.xlu1 %v2362_v44, %s3513_s0  ;;  %v2481_v4 = vld [vmem:[#allocation4 + $0xa0] sm:$0xff] }
 0x7fa   :  { %2445 = vrot.lane.b32.xlu0 %v2361_v45, %s3513_s0  ;;  %v3480_v10 = vpack.c.bf16 %v2482_v5, %v2481_v4 }
 0x7fc   :  { %v2488_v12 = vld [vmem:[#allocation4 + $0xf8] sm:$0xff] }
 0x7fd   :  { %2451 = vrot.lane.b32.xlu1 %v2364_v46, %s3513_s0  ;;  %v2487_v11 = vld [vmem:[#allocation4 + $0xf0] sm:$0xff] }
 0x7fe   :  { %2449 = vrot.lane.b32.xlu0 %v2363_v47, %s3513_s0  ;;  %v3489_v13 = vpack.c.bf16 %v2488_v12, %v2487_v11 }
 0x802   :  { %2497 = vperm.xlu0 %3508, %v2494_v48  }
 0x843   :  { %v2392_v49 = vpop.permute.xlu1 %2391 }
 0x844   :  { %2414 = vst.msk [vmem:[#allocation4 + $0x18] sm:$0xff] %vm1649_vm2, %v2392_v49  ;;  %v2390_v50 = vpop.permute.xlu0 %2389 }
 0x845   :  { %2413 = vst.msk [vmem:[#allocation4 + $0x10] sm:$0xff] %vm1649_vm2, %v2390_v50 }
 0x847   :  { %v2396_v51 = vpop.permute.xlu1 %2395 }
 0x848   :  { %2416 = vst.msk [vmem:[#allocation4 + $0x68] sm:$0xff] %vm1649_vm2, %v2396_v51  ;;  %v2394_v52 = vpop.permute.xlu0 %2393 }
 0x849   :  { %2415 = vst.msk [vmem:[#allocation4 + $0x60] sm:$0xff] %vm1649_vm2, %v2394_v52 }
 0x84b   :  { %v2440_v53 = vpop.permute.xlu1 %2439  ;;  %v2472_v55 = vld [vmem:[#allocation4 + $0x18] sm:$0xff] }
 0x84c   :  { %2462 = vst.msk [vmem:[#allocation4 + $0x28] sm:$0xff] %vm1649_vm2, %v2440_v53  ;;  %v2438_v56 = vpop.permute.xlu0 %2437  ;;  %v2471_v57 = vld [vmem:[#allocation4 + $0x10] sm:$0xff] }
 0x84d   :  { %2461 = vst.msk [vmem:[#allocation4 + $0x20] sm:$0xff] %vm1649_vm2, %v2438_v56  ;;  %v3465_v58 = vpack.c.bf16 %v2472_v55, %v2471_v57 }
 0x84f   :  { %3466 = vmatpush3.bf16.msra.mxu0 %v3465_v58  ;;  %v2444_v59 = vpop.permute.xlu1 %2443  ;;  %v2478_v60 = vld [vmem:[#allocation4 + $0x68] sm:$0xff] }
 0x850   :  { %2464 = vst.msk [vmem:[#allocation4 + $0x78] sm:$0xff] %vm1649_vm2, %v2444_v59  ;;  %v2442_v61 = vpop.permute.xlu0 %2441  ;;  %v2477_v62 = vld [vmem:[#allocation4 + $0x60] sm:$0xff]  ;;  %3467 = vmatprep.subr.bf16.mxu0 %v3517_v54 }
 0x851   :  { %2463 = vst.msk [vmem:[#allocation4 + $0x70] sm:$0xff] %vm1649_vm2, %v2442_v61  ;;  %v3474_v63 = vpack.c.bf16 %v2478_v60, %v2477_v62 }
 0x853   :  { %3475 = vmatpush3.bf16.msra.mxu1 %v3474_v63  ;;  %v2474_v0 = vld [vmem:[#allocation4 + $0x28] sm:$0xff] }
 0x854   :  { %v2473_v1 = vld [vmem:[#allocation4 + $0x20] sm:$0xff]  ;;  %3476 = vmatprep.subr.bf16.mxu1 %v3517_v54 }
 0x855   :  { %v3468_v3 = vpack.c.bf16 %v2474_v0, %v2473_v1 }
 0x857   :  { %3469 = vmatpush3.bf16.msra.mxu0 %v3468_v3  ;;  %v2480_v7 = vld [vmem:[#allocation4 + $0x78] sm:$0xff] }
 0x858   :  { %3479 = vmatprep.subr.bf16.mxu0 %v3517_v54  ;;  %v2479_v8 = vld [vmem:[#allocation4 + $0x70] sm:$0xff] }
 0x859   :  { %v3477_v9 = vpack.c.bf16 %v2480_v7, %v2479_v8 }
 0x85a   :  { %3254 = vmatmul.mubr.msk.f32.vlgmr.msra.gmra.mrb[20].mxu0 %vm2504_vm8, %v2493_v6 }
 0x85b   :  { %3478 = vmatpush3.bf16.msra.mxu1 %v3477_v9  ;;  %3481 = vmatpush3.bf16.msra.mxu0 %v3480_v10 }
 0x85c   :  { %3488 = vmatprep.subr.bf16.mxu1 %v3517_v54  ;;  %3482 = vmatprep.subr.bf16.mxu0 %v3517_v54 }
 0x85d   :  { %3283 = vmatprep.mubr.msk.f32.mxu0 %vm3515_vm3, %v3510_v2 }
 0x85e   :  { %3269 = vmatmul.mubr.msk.f32.vlgmr.msra.gmra.mrb[20].mxu1 %vm2504_vm8, %v2493_v6 }
 0x85f   :  { %3490 = vmatpush3.bf16.msra.mxu1 %v3489_v13  ;;  %3298 = vmatprep.mubr.msk.f32.mxu1 %vm3515_vm3, %v3510_v2  ;;  %vm2788_vm3 = vcmask 24576  }
 0x860   :  { %3491 = vmatprep.subr.bf16.mxu1 %v3517_v54 }
 0x863   :  { %v2400_v14 = vpop.permute.xlu1 %2399 }
 0x864   :  { %2418 = vst.msk [vmem:[#allocation4 + $0xb8] sm:$0xff] %vm1649_vm2, %v2400_v14  ;;  %v2398_v15 = vpop.permute.xlu0 %2397 }
 0x865   :  { %2417 = vst.msk [vmem:[#allocation4 + $0xb0] sm:$0xff] %vm1649_vm2, %v2398_v15 }
 0x867   :  { %v2404_v16 = vpop.permute.xlu1 %2403 }
 0x868   :  { %2420 = vst.msk [vmem:[#allocation4 + $0x108] sm:$0xff] %vm1649_vm2, %v2404_v16  ;;  %v2402_v17 = vpop.permute.xlu0 %2401 }
 0x869   :  { %2419 = vst.msk [vmem:[#allocation4 + $0x100] sm:$0xff] %vm1649_vm2, %v2402_v17 }
 0x86b   :  { %v2448_v18 = vpop.permute.xlu1 %2447  ;;  %v2484_v19 = vld [vmem:[#allocation4 + $0xb8] sm:$0xff] }
 0x86c   :  { %2466 = vst.msk [vmem:[#allocation4 + $0xc8] sm:$0xff] %vm1649_vm2, %v2448_v18  ;;  %v2446_v20 = vpop.permute.xlu0 %2445  ;;  %v2483_v2 = vld [vmem:[#allocation4 + $0xb0] sm:$0xff] }
 0x86d   :  { %2465 = vst.msk [vmem:[#allocation4 + $0xc0] sm:$0xff] %vm1649_vm2, %v2446_v20  ;;  %v3483_v21 = vpack.c.bf16 %v2484_v19, %v2483_v2 }
 0x86f   :  { %3484 = vmatpush3.bf16.msra.mxu0 %v3483_v21  ;;  %v2452_v22 = vpop.permute.xlu1 %2451  ;;  %v2490_v23 = vld [vmem:[#allocation4 + $0x108] sm:$0xff] }
 0x870   :  { %2468 = vst.msk [vmem:[#allocation4 + $0x118] sm:$0xff] %vm1649_vm2, %v2452_v22  ;;  %v2450_v24 = vpop.permute.xlu0 %2449  ;;  %v2489_v26 = vld [vmem:[#allocation4 + $0x100] sm:$0xff]  ;;  %3485 = vmatprep.subr.bf16.mxu0 %v3517_v54 }
 0x871   :  { %2467 = vst.msk [vmem:[#allocation4 + $0x110] sm:$0xff] %vm1649_vm2, %v2450_v24  ;;  %v3492_v27 = vpack.c.bf16 %v2490_v23, %v2489_v26 }
 0x873   :  { %3493 = vmatpush3.bf16.msra.mxu1 %v3492_v27  ;;  %v2486_v28 = vld [vmem:[#allocation4 + $0xc8] sm:$0xff] }
 0x874   :  { %v2485_v29 = vld [vmem:[#allocation4 + $0xc0] sm:$0xff]  ;;  %3494 = vmatprep.subr.bf16.mxu1 %v3517_v54 }
 0x875   :  { %v3486_v30 = vpack.c.bf16 %v2486_v28, %v2485_v29 }
 0x877   :  { %3487 = vmatpush3.bf16.msra.mxu0 %v3486_v30  ;;  %v2492_v31 = vld [vmem:[#allocation4 + $0x118] sm:$0xff] }
 0x878   :  { %v2491_v32 = vld [vmem:[#allocation4 + $0x110] sm:$0xff] }
 0x879   :  { %v3495_v33 = vpack.c.bf16 %v2492_v31, %v2491_v32 }
 0x87a   :  { %3284 = vmatmul.mubr.msk.f32.vlgmr.msra.gmra.mrb[22].mxu0 %vm2504_vm8, %v2493_v6 }
 0x87b   :  { %3496 = vmatpush3.bf16.msra.mxu1 %v3495_v33 }
 0x87e   :  { %3299 = vmatmul.mubr.msk.f32.vlgmr.msra.gmra.mrb[22].mxu1 %vm2504_vm8, %v2493_v6 }
 0x881   :  { %v2498_v25 = vpop.permute.xlu0 %2497 }
 0x882   :  { %v2503_v37 = vrot.slane %v2498_v25, %v2502_v36 }
 0x92d   :  { %v2574_v38 = vpop.f32.mrb[20].mxu0 }
 0x92e   :  { %v2575_v39 = vadd.f32 %v2574_v38, %v2503_v37  ;;  %v3255_v40 = vpop.f32.mrb[21].mxu0 }
 0x930   :  { %2789 = vst.msk [vmem:[%s4186_s14] sm:$0x1] %vm2788_vm3, %v2575_v39 }
 0x931   :  { %v2644_v54 = vpop.f32.mrb[20].mxu1 }
 0x932   :  { %v2645_v41 = vadd.f32 %v2644_v54, %v2503_v37  ;;  %v3270_v42 = vpop.f32.mrb[21].mxu1 }
 0x934   :  { %2790 = vst.msk [vmem:[%s4186_s14 + $0x1] sm:$0x1] %vm2788_vm3, %v2645_v41 }
 0x94d   :  { %v2714_v43 = vpop.f32.mrb[22].mxu0 }
 0x94e   :  { %v2715_v44 = vadd.f32 %v2714_v43, %v2503_v37  ;;  %v3285_v45 = vpop.f32.mrb[23].mxu0 }
 0x950   :  { %2791 = vst.msk [vmem:[%s4186_s14 + $0x2] sm:$0x1] %vm2788_vm3, %v2715_v44 }
 0x951   :  { %v2784_v46 = vpop.f32.mrb[22].mxu1 }
 0x952   :  { %v2785_v47 = vadd.f32 %v2784_v46, %v2503_v37  ;;  %v3300_v48 = vpop.f32.mrb[23].mxu1 }
 0x954   :  { %2792 = vst.msk [vmem:[%s4186_s14 + $0x3] sm:$0x1] %vm2788_vm3, %v2785_v47 }

</bundles_post_ra>
